<compile_context>
chip_gen: v7x
topology: tpu7x:2x2x1
jax: 0.10.0
libtpu: 0.0.40
codegen_flags: <defaults>
</compile_context>

<pallas_src>
import jax
import jax.numpy as jnp
from jax.experimental import pallas as pl
from jax.experimental.pallas import tpu as pltpu

N_SITES = 12
CONV_K = 3  # assumed Cnn12Sites kernel size (circular padding)
LANES = 128


# ----------------------------------------------------------------------------
# Block-circulant rewrite of a circular 1-D conv:  (B, S*Cin) @ (S*Cin, S*Cout)
# ----------------------------------------------------------------------------
def _circulant_matrix(w, S):
    """w: (K, Cin, Cout) taps of a circular conv  ->  dense (S*Cin, S*Cout).

    Flattening is site-major / channel-minor on both sides, so
      out[b, s*Cout+co] = sum_k sum_ci x[b, ((s+k-K//2) mod S)*Cin + ci] * w[k, ci, co]
    which matches a kernel_size=K circular conv over the sites axis.
    """
    K = w.shape[0]
    pad = K // 2
    eye = jnp.eye(S, dtype=w.dtype)
    return sum(jnp.kron(jnp.roll(eye, k - pad, axis=0), w[k]) for k in range(K))


def _round_up(x, m):
    return -(-x // m) * m


# ----------------------------------------------------------------------------
# Pallas wrapper + kernel (kernel is a closure so widths follow the params)
# ----------------------------------------------------------------------------
def twelve_sites_nn2(lambdas, zs, params, *, batch_tile=512):
    """Pallas forward.  lambdas: (B, 1)  zs: (B, n_sites, cin)  ->  (B,)"""
    B = int(lambdas.shape[0])
    S = int(zs.shape[1])
    cin = int(zs.shape[2])

    p = {k: jnp.asarray(v, jnp.float32) for k, v in params.items()}
    w_a = p["lw1"].shape[1]     # scale_width(32)
    w_b = p["lw2"].shape[1]     # scale_width(64)
    c1 = p["cw1"].shape[2]      # 32
    c2 = p["cw2"].shape[2]      # 64
    w_c = p["fw1"].shape[1]     # scale_width(128)
    w_d = p["fw2"].shape[1]     # scale_width(64)
    S_c1 = S * c1
    S_c2 = S * c2
    feat_in = S * cin
    feat_pad = _round_up(feat_in, LANES)   # lane-dense zs stream (24 -> 128)

    bf16 = jnp.bfloat16

    # --- lane-dense bf16 weights, rebuilt from the current params -----------------
    w1c = _circulant_matrix(p["cw1"], S)                                # (S*cin, S*c1)
    w1c = jnp.pad(w1c, ((0, feat_pad - feat_in), (0, 0))).astype(bf16)  # (128,  S*c1)
    w2c = _circulant_matrix(p["cw2"], S).astype(bf16)                   # (S*c1, S*c2)
    lw2 = p["lw2"].astype(bf16)                                         # (w_a, w_b)
    fw1 = p["fw1"].astype(bf16)                                         # (w_b+c2, w_c) unsplit
    fw2 = p["fw2"].astype(bf16)                                         # (w_c, w_d)

    # --- pack all bias / row-vector params (f32) into one (9, vw) buffer ----------
    vw = max(w_a, w_b, S_c1, S_c2, w_c, w_d, 1)

    def _row(v):
        v = jnp.reshape(v, (-1,))
        return jnp.pad(v, (0, vw - v.shape[0]))

    vecs = jnp.stack([
        _row(p["lw1"]),                                            # 0: lw1      (w_a)
        _row(p["lb1"]),                                            # 1: lb1      (w_a)
        _row(p["lb2"]),                                            # 2: lb2      (w_b)
        _row(jnp.tile(jnp.reshape(p["cb1"], (1, c1)), (1, S))),    # 3: conv1 b  (S*c1)
        _row(jnp.tile(jnp.reshape(p["cb2"], (1, c2)), (1, S))),    # 4: conv2 b  (S*c2)
        _row(p["fb1"]),                                            # 5: fb1      (w_c)
        _row(p["fb2"]),                                            # 6: fb2      (w_d)
        _row(jnp.transpose(p["fw3"])),                             # 7: fw3^T    (w_d)
        _row(p["fb3"]),                                            # 8: fb3      (1)
    ])

    # --- inputs --------------------------------------------------------------------
    lam2d = jnp.asarray(lambdas, jnp.float32).reshape(B, 1)
    zs_flat = jnp.asarray(zs, jnp.float32).reshape(B, feat_in)
    zs_flat = jnp.pad(zs_flat, ((0, 0), (0, feat_pad - feat_in))).astype(bf16)

    # --- batch tiling ----------------------------------------------------------------
    if B >= 128:
        tb = _round_up(min(batch_tile, B), LANES)
        if B >= 256:                              # >= 2 "parallel" tiles (v7x megacore)
            tb = min(tb, _round_up(-(-B // 2), LANES))
        tb = max(tb, LANES)
    else:
        tb = _round_up(B, 8)                      # whole (small) batch in one tile
    n_tiles = -(-B // tb)
    Bp = n_tiles * tb
    if Bp != B:
        lam2d = jnp.pad(lam2d, ((0, Bp - B), (0, 0)))
        zs_flat = jnp.pad(zs_flat, ((0, Bp - B), (0, 0)))

    # --- explicit VMEM budget (avoid 16 MiB v5e / 32 MiB v6e-v7x scoped defaults) ----
    weight_bytes = sum(int(a.size) * a.dtype.itemsize
                       for a in (vecs, lw2, w1c, w2c, fw1, fw2))
    est = (2 * tb * feat_pad * 2                                    # zs tiles (bf16, 2 bufs)
           + 2 * tb * 4                                             # lambdas tiles
           + 2 * weight_bytes                                       # weights (2 bufs each)
           + 4 * tb * (S_c1 + S_c2 + w_c + w_d + w_a + w_b + 2 * LANES)  # f32 temporaries
           + 2 * tb * 4)                                            # output tiles
    vmem_limit = int(min(56 * 2**20, max(32 * 2**20, 2 * est)))     # <= v7x physical 64 MiB

    # --- kernel -----------------------------------------------------------------
    def kernel(lam_ref, zs_ref, vecs_ref,
               lw2_ref, w1c_ref, w2c_ref, fw1_ref, fw2_ref,
               out_ref):
        relu = lambda v: jnp.maximum(v, 0.0)
        dot = lambda a, b: jnp.dot(a, b, preferred_element_type=jnp.float32)

        # lambdas branch: Linear(1, w_a) as a VPU broadcast outer product (kept f32).
        lam = lam_ref[...]                                                    # (tb, 1)
        h = relu(lam * vecs_ref[0:1, 0:w_a] + vecs_ref[1:2, 0:w_a])           # (tb, w_a)
        lam_out = relu(dot(h.astype(bf16), lw2_ref[...])
                       + vecs_ref[2:3, 0:w_b])                                # (tb, w_b)

        # zs branch: circular convs as dense block-circulant bf16 matmuls (f32 accum).
        z = relu(dot(zs_ref[...], w1c_ref[...]) + vecs_ref[3:4, 0:S_c1])      # (tb, S*c1)
        z = relu(dot(z.astype(bf16), w2c_ref[...]) + vecs_ref[4:5, 0:S_c2])   # (tb, S*c2)

        # AdaptiveAvgPool1d(1) over sites = mean of the S per-site c2-wide lane blocks.
        if (2 * c2 == LANES) and (S_c2 % LANES == 0):
            # Tree-add the full-128-lane chunks, then fold the even/odd-site halves
            # with one XLU roll (MXU/VPU slots stay free).
            chunks = [z[:, j * LANES:(j + 1) * LANES] for j in range(S_c2 // LANES)]
            while len(chunks) > 1:
                nxt = [chunks[i] + chunks[i + 1]
                       for i in range(0, len(chunks) - 1, 2)]
                if len(chunks) % 2:
                    nxt.append(chunks[-1])
                chunks = nxt
            acc = chunks[0]                                                   # (tb, 128)
            acc = acc + pltpu.roll(acc, shift=c2, axis=1)
            zp = acc[:, 0:c2] * (1.0 / S)                                     # (tb, c2)
        else:
            zp = z[:, 0:c2]
            for s in range(1, S):
                zp = zp + z[:, s * c2:(s + 1) * c2]
            zp = zp * (1.0 / S)                                               # (tb, c2)

        # head: single fused (tb, w_b+c2) @ (w_b+c2, w_c) matmul (static lane concat).
        cat = jnp.concatenate([lam_out, zp], axis=-1).astype(bf16)            # (tb, w_b+c2)
        f = relu(dot(cat, fw1_ref[...]) + vecs_ref[5:6, 0:w_c])               # (tb, w_c)
        f = relu(dot(f.astype(bf16), fw2_ref[...]) + vecs_ref[6:7, 0:w_d])    # (tb, w_d)

        # final Linear(w_d, 1) as (1, w_d) x (tb, w_d)^T -> lane-dense (1, tb) row.
        out = jax.lax.dot_general(vecs_ref[7:8, 0:w_d], f,
                                  dimension_numbers=(((1,), (1,)), ((), ())),
                                  preferred_element_type=jnp.float32)         # (1, tb)
        out_ref[0] = out + vecs_ref[8:9, 0:1]

    # --- specs ------------------------------------------------------------------
    # TODO(synk): constant-index weight specs could be single-buffered
    # (pipeline_mode=pl.Buffered(1)); skipped because all weights are < 1 MB in bf16
    # and the second pipeline buffer is negligible against the explicit VMEM budget.
    def full_spec(arr):
        nd = arr.ndim
        return pl.BlockSpec(arr.shape, lambda i, _nd=nd: (0,) * _nd)

    in_specs = [
        pl.BlockSpec((tb, 1), lambda i: (i, 0)),             # lambdas
        pl.BlockSpec((tb, feat_pad), lambda i: (i, 0)),      # zs (flattened, lane-padded)
        full_spec(vecs),
        full_spec(lw2), full_spec(w1c), full_spec(w2c),
        full_spec(fw1), full_spec(fw2),
    ]
    out_spec = pl.BlockSpec((1, 1, tb), lambda i: (i, 0, 0))

    out = pl.pallas_call(
        kernel,
        out_shape=jax.ShapeDtypeStruct((n_tiles, 1, tb), jnp.float32),
        grid=(n_tiles,),
        in_specs=in_specs,
        out_specs=out_spec,
        compiler_params=pltpu.CompilerParams(
            dimension_semantics=("parallel",),
            vmem_limit_bytes=vmem_limit),
    )(lam2d, zs_flat, vecs, lw2, w1c, w2c, fw1, fw2)

    return out.reshape(Bp)[:B]


# ----------------------------------------------------------------------------
# Deterministic parameter init (mimics torch default U(-1/sqrt(fan_in), ...))
# ----------------------------------------------------------------------------
def _linear_params(key, fan_in, fan_out):
    kw, kb = jax.random.split(key)
    bound = float(fan_in) ** -0.5
    w = jax.random.uniform(kw, (fan_in, fan_out), jnp.float32, -bound, bound)
    b = jax.random.uniform(kb, (1, fan_out), jnp.float32, -bound, bound)
    return w, b


def _conv_params(key, k, cin, cout):
    kw, kb = jax.random.split(key)
    bound = float(cin * k) ** -0.5
    w = jax.random.uniform(kw, (k, cin, cout), jnp.float32, -bound, bound)
    b = jax.random.uniform(kb, (1, cout), jnp.float32, -bound, bound)
    return w, b


def init_params(key, n_sites=N_SITES):
    width_scale = (n_sites / 12.0) ** 0.5
    sw = lambda w: int(w * width_scale + 0.5)
    keys = jax.random.split(key, 7)
    p = {}
    p["lw1"], p["lb1"] = _linear_params(keys[0], 1, sw(32))
    p["lw2"], p["lb2"] = _linear_params(keys[1], sw(32), sw(64))
    p["cw1"], p["cb1"] = _conv_params(keys[2], CONV_K, 2, 32)
    p["cw2"], p["cb2"] = _conv_params(keys[3], CONV_K, 32, 64)
    p["fw1"], p["fb1"] = _linear_params(keys[4], 64 + sw(64), sw(128))
    p["fw2"], p["fb2"] = _linear_params(keys[5], sw(128), sw(64))
    p["fw3"], p["fb3"] = _linear_params(keys[6], sw(64), 1)
    return p


# ----------------------------------------------------------------------------
# Pure-JAX f32 reference (original un-flattened math) for the correctness check.
# ----------------------------------------------------------------------------
def reference_forward(lambdas, zs, p):
    relu = lambda v: jnp.maximum(v, 0.0)

    def conv(x, w, b):
        S = x.shape[1]
        xpad = jnp.concatenate([x[:, S - 1:S], x, x[:, 0:1]], axis=1)
        y = sum(jnp.einsum("bsi,io->bso", xpad[:, k:k + S], w[k]) for k in range(CONV_K))
        return y + b.reshape(1, 1, -1)

    h = relu(lambdas @ p["lw1"] + p["lb1"])
    lam_out = relu(h @ p["lw2"] + p["lb2"])
    z = relu(conv(zs, p["cw1"], p["cb1"]))
    z = relu(conv(z, p["cw2"], p["cb2"]))
    z_pool = jnp.mean(z, axis=1)
    c = jnp.concatenate([lam_out, z_pool], axis=1)
    f = relu(c @ p["fw1"] + p["fb1"])
    f = relu(f @ p["fw2"] + p["fb2"])
    return (f @ p["fw3"] + p["fb3"])[:, 0]


if __name__ == "__main__":
    key = jax.random.PRNGKey(0)
    kp, kl, kz = jax.random.split(key, 3)
    params = init_params(kp)

    # bf16 MXU operands (f32 accumulation) vs. an f32 reference -> looser tolerance.
    ATOL = 5e-2
    RTOL = 5e-2

    # Small batch: single-tile path (grid=(1,)).
    B = 16
    lambdas = jax.random.uniform(kl, (B, 1), jnp.float32)
    zs = jax.random.bernoulli(kz, 0.5, (B, N_SITES, 2)).astype(jnp.float32)
    out = jax.block_until_ready(twelve_sites_nn2(lambdas, zs, params))
    ref = reference_forward(lambdas, zs, params)
    assert out.shape == (B,), out.shape
    assert jnp.allclose(out, ref, atol=ATOL, rtol=RTOL), (out, ref)

    # Multi-tile path (grid > 1, 128-multiple tiles, batch padding).
    B2 = 300
    kl2, kz2 = jax.random.split(jax.random.PRNGKey(1))
    lambdas2 = jax.random.uniform(kl2, (B2, 1), jnp.float32)
    zs2 = jax.random.bernoulli(kz2, 0.5, (B2, N_SITES, 2)).astype(jnp.float32)
    out2 = jax.block_until_ready(
        twelve_sites_nn2(lambdas2, zs2, params, batch_tile=128))
    ref2 = reference_forward(lambdas2, zs2, params)
    assert out2.shape == (B2,), out2.shape
    assert jnp.allclose(out2, ref2, atol=ATOL, rtol=RTOL), (out2, ref2)

    print("KERNEL_OK")
</pallas_src>

<mosaic_0001>
module attributes {stable_mosaic.version = 11 : i64} {
  func.func @kernel(%arg0: i32, %arg1: memref<16x1xf32, #tpu.memory_space<vmem>>, %arg2: memref<16x128xbf16, #tpu.memory_space<vmem>>, %arg3: memref<9x768xf32, #tpu.memory_space<vmem>>, %arg4: memref<32x64xbf16, #tpu.memory_space<vmem>>, %arg5: memref<128x384xbf16, #tpu.memory_space<vmem>>, %arg6: memref<384x768xbf16, #tpu.memory_space<vmem>>, %arg7: memref<128x128xbf16, #tpu.memory_space<vmem>>, %arg8: memref<128x64xbf16, #tpu.memory_space<vmem>>, %arg9: memref<1x1x16xf32, #tpu.memory_space<vmem>>) attributes {dimension_semantics = [#tpu.dimension_semantics<parallel>], iteration_bounds = array<i64: 1>, scalar_prefetch = 0 : i64, scratch_operands = 0 : i64, tpu.core_type = #tpu.core_type<tc>, window_params = [{transform_indices = @transform_0, window_bounds = array<i64: 16, 1>}, {transform_indices = @transform_1, window_bounds = array<i64: 16, 128>}, {pipeline_mode = #tpu.pipeline_mode<synchronous>, transform_indices = @transform_2, window_bounds = array<i64: 9, 768>}, {pipeline_mode = #tpu.pipeline_mode<synchronous>, transform_indices = @transform_3, window_bounds = array<i64: 32, 64>}, {pipeline_mode = #tpu.pipeline_mode<synchronous>, transform_indices = @transform_4, window_bounds = array<i64: 128, 384>}, {pipeline_mode = #tpu.pipeline_mode<synchronous>, transform_indices = @transform_5, window_bounds = array<i64: 384, 768>}, {pipeline_mode = #tpu.pipeline_mode<synchronous>, transform_indices = @transform_6, window_bounds = array<i64: 128, 128>}, {pipeline_mode = #tpu.pipeline_mode<synchronous>, transform_indices = @transform_7, window_bounds = array<i64: 128, 64>}, {transform_indices = @transform_8, window_bounds = array<i64: 1, 1, 16>}]} {
    %c0 = arith.constant 0 : index
    %c0_0 = arith.constant 0 : index
    %0 = vector.load %arg1[%c0, %c0_0] : memref<16x1xf32, #tpu.memory_space<vmem>>, vector<16x1xf32>
    %c0_1 = arith.constant 0 : index
    %c0_2 = arith.constant 0 : index
    %1 = vector.load %arg3[%c0_1, %c0_2] : memref<9x768xf32, #tpu.memory_space<vmem>>, vector<1x32xf32>
    %2 = vector.broadcast %0 : vector<16x1xf32> to vector<16x32xf32>
    %3 = vector.broadcast %1 : vector<1x32xf32> to vector<16x32xf32>
    %4 = arith.mulf %2, %3 : vector<16x32xf32>
    %c1 = arith.constant 1 : index
    %c0_3 = arith.constant 0 : index
    %5 = vector.load %arg3[%c1, %c0_3] : memref<9x768xf32, #tpu.memory_space<vmem>>, vector<1x32xf32>
    %6 = vector.broadcast %5 : vector<1x32xf32> to vector<16x32xf32>
    %7 = arith.addf %4, %6 : vector<16x32xf32>
    %cst = arith.constant 0.000000e+00 : f32
    %8 = vector.broadcast %cst : f32 to vector<16x32xf32>
    %9 = arith.maximumf %7, %8 : vector<16x32xf32>
    %10 = arith.truncf %9 : vector<16x32xf32> to vector<16x32xbf16>
    %c0_4 = arith.constant 0 : index
    %c0_5 = arith.constant 0 : index
    %11 = vector.load %arg4[%c0_4, %c0_5] : memref<32x64xbf16, #tpu.memory_space<vmem>>, vector<32x64xbf16>
    %cst_6 = arith.constant dense<0.000000e+00> : vector<16x64xf32>
    %12 = tpu.matmul %10, %11, %cst_6 {dimension_numbers = #tpu.dot_dimension_numbers<[1], [0], [0], [1], [0, 0, 1, 1], [], []>} : vector<16x32xbf16>, vector<32x64xbf16>, vector<16x64xf32> -> vector<16x64xf32>
    %c2 = arith.constant 2 : index
    %c0_7 = arith.constant 0 : index
    %13 = vector.load %arg3[%c2, %c0_7] : memref<9x768xf32, #tpu.memory_space<vmem>>, vector<1x64xf32>
    %14 = vector.broadcast %13 : vector<1x64xf32> to vector<16x64xf32>
    %15 = arith.addf %12, %14 : vector<16x64xf32>
    %cst_8 = arith.constant 0.000000e+00 : f32
    %16 = vector.broadcast %cst_8 : f32 to vector<16x64xf32>
    %17 = arith.maximumf %15, %16 : vector<16x64xf32>
    %c0_9 = arith.constant 0 : index
    %c0_10 = arith.constant 0 : index
    %18 = vector.load %arg2[%c0_9, %c0_10] : memref<16x128xbf16, #tpu.memory_space<vmem>>, vector<16x128xbf16>
    %c0_11 = arith.constant 0 : index
    %c0_12 = arith.constant 0 : index
    %19 = vector.load %arg5[%c0_11, %c0_12] : memref<128x384xbf16, #tpu.memory_space<vmem>>, vector<128x384xbf16>
    %cst_13 = arith.constant dense<0.000000e+00> : vector<16x384xf32>
    %20 = tpu.matmul %18, %19, %cst_13 {dimension_numbers = #tpu.dot_dimension_numbers<[1], [0], [0], [1], [0, 0, 1, 1], [], []>} : vector<16x128xbf16>, vector<128x384xbf16>, vector<16x384xf32> -> vector<16x384xf32>
    %c3 = arith.constant 3 : index
    %c0_14 = arith.constant 0 : index
    %21 = vector.load %arg3[%c3, %c0_14] : memref<9x768xf32, #tpu.memory_space<vmem>>, vector<1x384xf32>
    %22 = vector.broadcast %21 : vector<1x384xf32> to vector<16x384xf32>
    %23 = arith.addf %20, %22 : vector<16x384xf32>
    %cst_15 = arith.constant 0.000000e+00 : f32
    %24 = vector.broadcast %cst_15 : f32 to vector<16x384xf32>
    %25 = arith.maximumf %23, %24 : vector<16x384xf32>
    %26 = arith.truncf %25 : vector<16x384xf32> to vector<16x384xbf16>
    %c0_16 = arith.constant 0 : index
    %c0_17 = arith.constant 0 : index
    %27 = vector.load %arg6[%c0_16, %c0_17] : memref<384x768xbf16, #tpu.memory_space<vmem>>, vector<384x768xbf16>
    %cst_18 = arith.constant dense<0.000000e+00> : vector<16x768xf32>
    %28 = tpu.matmul %26, %27, %cst_18 {dimension_numbers = #tpu.dot_dimension_numbers<[1], [0], [0], [1], [0, 0, 1, 1], [], []>} : vector<16x384xbf16>, vector<384x768xbf16>, vector<16x768xf32> -> vector<16x768xf32>
    %c4 = arith.constant 4 : index
    %c0_19 = arith.constant 0 : index
    %29 = vector.load %arg3[%c4, %c0_19] : memref<9x768xf32, #tpu.memory_space<vmem>>, vector<1x768xf32>
    %30 = vector.broadcast %29 : vector<1x768xf32> to vector<16x768xf32>
    %31 = arith.addf %28, %30 : vector<16x768xf32>
    %cst_20 = arith.constant 0.000000e+00 : f32
    %32 = vector.broadcast %cst_20 : f32 to vector<16x768xf32>
    %33 = arith.maximumf %31, %32 : vector<16x768xf32>
    %34 = vector.extract_strided_slice %33 {offsets = [0, 0], sizes = [16, 128], strides = [1, 1]} : vector<16x768xf32> to vector<16x128xf32>
    %35 = vector.extract_strided_slice %33 {offsets = [0, 128], sizes = [16, 128], strides = [1, 1]} : vector<16x768xf32> to vector<16x128xf32>
    %36 = vector.extract_strided_slice %33 {offsets = [0, 256], sizes = [16, 128], strides = [1, 1]} : vector<16x768xf32> to vector<16x128xf32>
    %37 = vector.extract_strided_slice %33 {offsets = [0, 384], sizes = [16, 128], strides = [1, 1]} : vector<16x768xf32> to vector<16x128xf32>
    %38 = vector.extract_strided_slice %33 {offsets = [0, 512], sizes = [16, 128], strides = [1, 1]} : vector<16x768xf32> to vector<16x128xf32>
    %39 = vector.extract_strided_slice %33 {offsets = [0, 640], sizes = [16, 128], strides = [1, 1]} : vector<16x768xf32> to vector<16x128xf32>
    %40 = arith.addf %34, %35 : vector<16x128xf32>
    %41 = arith.addf %36, %37 : vector<16x128xf32>
    %42 = arith.addf %38, %39 : vector<16x128xf32>
    %43 = arith.addf %40, %41 : vector<16x128xf32>
    %44 = arith.addf %43, %42 : vector<16x128xf32>
    %c64_i32 = arith.constant 64 : i32
    %45 = tpu.dynamic_rotate %44 by %c64_i32 dim 1 : vector<16x128xf32>, i32 -> vector<16x128xf32>
    %46 = arith.addf %44, %45 : vector<16x128xf32>
    %47 = vector.extract_strided_slice %46 {offsets = [0, 0], sizes = [16, 64], strides = [1, 1]} : vector<16x128xf32> to vector<16x64xf32>
    %cst_21 = arith.constant 0.0833333358 : f32
    %48 = vector.broadcast %cst_21 : f32 to vector<16x64xf32>
    %49 = arith.mulf %47, %48 : vector<16x64xf32>
    %50 = tpu.concatenate %17, %49 in 1 : vector<16x64xf32>, vector<16x64xf32> -> vector<16x128xf32>
    %51 = arith.truncf %50 : vector<16x128xf32> to vector<16x128xbf16>
    %c0_22 = arith.constant 0 : index
    %c0_23 = arith.constant 0 : index
    %52 = vector.load %arg7[%c0_22, %c0_23] : memref<128x128xbf16, #tpu.memory_space<vmem>>, vector<128x128xbf16>
    %cst_24 = arith.constant dense<0.000000e+00> : vector<16x128xf32>
    %53 = tpu.matmul %51, %52, %cst_24 {dimension_numbers = #tpu.dot_dimension_numbers<[1], [0], [0], [1], [0, 0, 1, 1], [], []>} : vector<16x128xbf16>, vector<128x128xbf16>, vector<16x128xf32> -> vector<16x128xf32>
    %c5 = arith.constant 5 : index
    %c0_25 = arith.constant 0 : index
    %54 = vector.load %arg3[%c5, %c0_25] : memref<9x768xf32, #tpu.memory_space<vmem>>, vector<1x128xf32>
    %55 = vector.broadcast %54 : vector<1x128xf32> to vector<16x128xf32>
    %56 = arith.addf %53, %55 : vector<16x128xf32>
    %cst_26 = arith.constant 0.000000e+00 : f32
    %57 = vector.broadcast %cst_26 : f32 to vector<16x128xf32>
    %58 = arith.maximumf %56, %57 : vector<16x128xf32>
    %59 = arith.truncf %58 : vector<16x128xf32> to vector<16x128xbf16>
    %c0_27 = arith.constant 0 : index
    %c0_28 = arith.constant 0 : index
    %60 = vector.load %arg8[%c0_27, %c0_28] : memref<128x64xbf16, #tpu.memory_space<vmem>>, vector<128x64xbf16>
    %cst_29 = arith.constant dense<0.000000e+00> : vector<16x64xf32>
    %61 = tpu.matmul %59, %60, %cst_29 {dimension_numbers = #tpu.dot_dimension_numbers<[1], [0], [0], [1], [0, 0, 1, 1], [], []>} : vector<16x128xbf16>, vector<128x64xbf16>, vector<16x64xf32> -> vector<16x64xf32>
    %c6 = arith.constant 6 : index
    %c0_30 = arith.constant 0 : index
    %62 = vector.load %arg3[%c6, %c0_30] : memref<9x768xf32, #tpu.memory_space<vmem>>, vector<1x64xf32>
    %63 = vector.broadcast %62 : vector<1x64xf32> to vector<16x64xf32>
    %64 = arith.addf %61, %63 : vector<16x64xf32>
    %cst_31 = arith.constant 0.000000e+00 : f32
    %65 = vector.broadcast %cst_31 : f32 to vector<16x64xf32>
    %66 = arith.maximumf %64, %65 : vector<16x64xf32>
    %c7 = arith.constant 7 : index
    %c0_32 = arith.constant 0 : index
    %67 = vector.load %arg3[%c7, %c0_32] : memref<9x768xf32, #tpu.memory_space<vmem>>, vector<1x64xf32>
    %cst_33 = arith.constant dense<0.000000e+00> : vector<1x16xf32>
    %68 = tpu.matmul %67, %66, %cst_33 {dimension_numbers = #tpu.dot_dimension_numbers<[1], [1], [0], [0], [0, 0, 1, 0], [], []>} : vector<1x64xf32>, vector<16x64xf32>, vector<1x16xf32> -> vector<1x16xf32>
    %c8 = arith.constant 8 : index
    %c0_34 = arith.constant 0 : index
    %69 = vector.load %arg3[%c8, %c0_34] : memref<9x768xf32, #tpu.memory_space<vmem>>, vector<1x1xf32>
    %70 = vector.broadcast %69 : vector<1x1xf32> to vector<1x16xf32>
    %71 = arith.addf %68, %70 : vector<1x16xf32>
    %c0_35 = arith.constant 0 : index
    %c0_36 = arith.constant 0 : index
    %c0_37 = arith.constant 0 : index
    %72 = vector.load %arg9[%c0_35, %c0_36, %c0_37] : memref<1x1x16xf32, #tpu.memory_space<vmem>>, vector<1x1x16xf32>
    %73 = vector.shape_cast %72 : vector<1x1x16xf32> to vector<1x16xf32>
    %74 = vector.shape_cast %71 : vector<1x16xf32> to vector<1x1x16xf32>
    tpu.vector_store %arg9[%c0_35, %c0_36, %c0_37], %74 {strides = array<i32>} : memref<1x1x16xf32, #tpu.memory_space<vmem>>, vector<1x1x16xf32>,
    return
  }
  func.func @transform_0(%arg0: i32) -> (i32, i32) {
    %c0_i32 = arith.constant 0 : i32
    %c0_i32_0 = arith.constant 0 : i32
    return %arg0, %c0_i32 : i32, i32
  }
  func.func @transform_1(%arg0: i32) -> (i32, i32) {
    %c0_i32 = arith.constant 0 : i32
    %c0_i32_0 = arith.constant 0 : i32
    return %arg0, %c0_i32 : i32, i32
  }
  func.func @transform_2(%arg0: i32) -> (i32, i32) {
    %c0_i32 = arith.constant 0 : i32
    %c0_i32_0 = arith.constant 0 : i32
    %c0_i32_1 = arith.constant 0 : i32
    return %c0_i32, %c0_i32_0 : i32, i32
  }
  func.func @transform_3(%arg0: i32) -> (i32, i32) {
    %c0_i32 = arith.constant 0 : i32
    %c0_i32_0 = arith.constant 0 : i32
    %c0_i32_1 = arith.constant 0 : i32
    return %c0_i32, %c0_i32_0 : i32, i32
  }
  func.func @transform_4(%arg0: i32) -> (i32, i32) {
    %c0_i32 = arith.constant 0 : i32
    %c0_i32_0 = arith.constant 0 : i32
    %c0_i32_1 = arith.constant 0 : i32
    return %c0_i32, %c0_i32_0 : i32, i32
  }
  func.func @transform_5(%arg0: i32) -> (i32, i32) {
    %c0_i32 = arith.constant 0 : i32
    %c0_i32_0 = arith.constant 0 : i32
    %c0_i32_1 = arith.constant 0 : i32
    return %c0_i32, %c0_i32_0 : i32, i32
  }
  func.func @transform_6(%arg0: i32) -> (i32, i32) {
    %c0_i32 = arith.constant 0 : i32
    %c0_i32_0 = arith.constant 0 : i32
    %c0_i32_1 = arith.constant 0 : i32
    return %c0_i32, %c0_i32_0 : i32, i32
  }
  func.func @transform_7(%arg0: i32) -> (i32, i32) {
    %c0_i32 = arith.constant 0 : i32
    %c0_i32_0 = arith.constant 0 : i32
    %c0_i32_1 = arith.constant 0 : i32
    return %c0_i32, %c0_i32_0 : i32, i32
  }
  func.func @transform_8(%arg0: i32) -> (i32, i32, i32) {
    %c0_i32 = arith.constant 0 : i32
    %c0_i32_0 = arith.constant 0 : i32
    %c0_i32_1 = arith.constant 0 : i32
    return %arg0, %c0_i32, %c0_i32_0 : i32, i32, i32
  }
}

</mosaic_0001>

<bundles_post_ra>
// kernel: tpu_custom_call.1
= control target key start
LH: loop header
LB: loop body
LE: loop exit
PB: predicated region body
PF: predicated region fallthrough
CT: control target
= control target key end

     0   :  { %13 = vsyncpa [#allocation3], 0  ;;  %s2997_s0 = inlined_call_operand.vmem [shape: f32[16,1], index: 0, kind: input, shape index: {}]   ;;  %s2998_s1 = inlined_call_operand.vmem [shape: bf16[16,128], index: 1, kind: input, shape index: {}]   ;;  %s2999_s2 = inlined_call_operand.vmem [shape: f32[9,768], index: 2, kind: input, shape index: {}]   ;;  %s3000_s3 = inlined_call_operand.hbm [shape: bf16[32,64], index: 3, kind: input, shape index: {}]   ;;  %s3001_s4 = inlined_call_operand.hbm [shape: bf16[128,384], index: 4, kind: input, shape index: {}]   ;;  %s3002_s5 = inlined_call_operand.hbm [shape: bf16[384,768], index: 5, kind: input, shape index: {}]   ;;  %s3003_s6 = inlined_call_operand.hbm [shape: bf16[128,128], index: 6, kind: input, shape index: {}]   ;;  %s3004_s7 = inlined_call_operand.vmem [shape: bf16[128,64], index: 7, kind: input, shape index: {}]   ;;  %s3005_s8 = inlined_call_operand.hbm [shape: f32[1,1,16], index: 8, kind: output, shape index: {}]  }
   0x1   :  { %14 = vsyncpa [#allocation6], 0 }
   0x2   :  { %15 = vsyncpa [#allocation9], 0 }
   0x3   :  { %16 = vsyncpa [#allocation4], 0  ;;  %s2708_s27 = smov [#allocation5]   ;;  %s2590_s9 = scalar_lea.hbm %s3001_s4, 3072 }
   0x4   :  { %s40_s28 = sshll.u32 %s2708_s27, 4  ;;  %p2591_p0 = scmp.ne.s32.totalorder %s3001_s4, %s2590_s9  ;;  %s41_s28 = int_to_ptr.vmem [resolvable:$true] %s40_s28 }
   0x5   :  { %p2594_p1 = scmp.lt.u32.totalorder %s2590_s9, %s3001_s4 }
   0x7   :  { %p2596_p2 = pnand %p2594_p1, %p2591_p0 }
   0x9   :  { %2599 = shalt.err (!%p2596_p2)
}
   0xa   :  { %s2600_s14 = scalar_lea.vmem %s41_s28, 3072  ;;  %p2605_p4 = scmp.lt.s32.totalorder %s41_s28, %s41_s28 }
   0xb   :  { %p2601_p3 = scmp.ne.s32.totalorder %s41_s28, %s2600_s14  ;;  %p2606_p5 = scmp.lt.s32.totalorder %s2600_s14, %s2600_s14 }
   0xd   :  { %p2607_p6 = por %p2606_p5, %p2605_p4 }
   0xf   :  { %p2608_p7 = pnand %p2607_p6, %p2601_p3 }
  0x11   :  { %2611 = shalt.err (!%p2608_p7)
}
  0x12   :  { %s2709_s15 = smov 192   ;;  %s2710_s16 = smov 12  }
  0x13   :  { %46 = dma.hbm_to_vmem [thread:$0]  %s3001_s4, 3072, %s41_s28, [#allocation6], %s2709_s15, %s2709_s15, %s2710_s16  }
  0x14   :  { %s2711_s19 = smov [#allocation2]   ;;  %s2612_s23 = scalar_lea.hbm %s3000_s3, 256 }
  0x15   :  { %s28_s20 = sshll.u32 %s2711_s19, 4  ;;  %p2613_p8 = scmp.ne.s32.totalorder %s3000_s3, %s2612_s23  ;;  %s29_s20 = int_to_ptr.vmem [resolvable:$true] %s28_s20 }
  0x16   :  { %p2616_p9 = scmp.lt.u32.totalorder %s2612_s23, %s3000_s3 }
  0x18   :  { %p2618_p10 = pnand %p2616_p9, %p2613_p8 }
  0x1a   :  { %2621 = shalt.err (!%p2618_p10)
}
  0x1b   :  { %s2622_s29 = scalar_lea.vmem %s29_s20, 256  ;;  %p2627_p12 = scmp.lt.s32.totalorder %s29_s20, %s29_s20 }
  0x1c   :  { %p2623_p11 = scmp.ne.s32.totalorder %s29_s20, %s2622_s29  ;;  %p2628_p13 = scmp.lt.s32.totalorder %s2622_s29, %s2622_s29 }
  0x1e   :  { %p2629_p0 = por %p2628_p13, %p2627_p12 }
  0x20   :  { %p2630_p1 = pnand %p2629_p0, %p2623_p11 }
  0x22   :  { %2633 = shalt.err (!%p2630_p1)
}
  0x23   :  { %s2712_s4 = smov 64   ;;  %s2713_s28 = smov 4  }
  0x24   :  { %34 = dma.hbm_to_vmem [thread:$0]  %s3000_s3, 256, %s29_s20, [#allocation3], %s2712_s4, %s2712_s4, %s2713_s28  }
  0x25   :  { %s2714_s10 = smov [#allocation7]   ;;  %s2634_s14 = scalar_lea.hbm %s3002_s5, 18432 }
  0x26   :  { %s52_s11 = sshll.u32 %s2714_s10, 4  ;;  %p2635_p2 = scmp.ne.s32.totalorder %s3002_s5, %s2634_s14  ;;  %s53_s11 = int_to_ptr.vmem [resolvable:$true] %s52_s11 }
  0x27   :  { %p2638_p3 = scmp.lt.u32.totalorder %s2634_s14, %s3002_s5 }
  0x29   :  { %p2640_p4 = pnand %p2638_p3, %p2635_p2 }
  0x2b   :  { %2643 = shalt.err (!%p2640_p4)
}
  0x2c   :  { %s2644_s19 = scalar_lea.vmem %s53_s11, 18432  ;;  %p2649_p6 = scmp.lt.s32.totalorder %s53_s11, %s53_s11 }
  0x2d   :  { %p2645_p5 = scmp.ne.s32.totalorder %s53_s11, %s2644_s19  ;;  %p2650_p7 = scmp.lt.s32.totalorder %s2644_s19, %s2644_s19 }
  0x2f   :  { %p2651_p8 = por %p2650_p7, %p2649_p6 }
  0x31   :  { %p2652_p9 = pnand %p2651_p8, %p2645_p5 }
  0x33   :  { %2655 = shalt.err (!%p2652_p9)
}
  0x34   :  { %s2715_s3 = smov 384   ;;  %s2716_s20 = smov 24  }
  0x35   :  { %58 = dma.hbm_to_vmem [thread:$0]  %s3002_s5, 18432, %s53_s11, [#allocation6], %s2715_s3, %s2715_s3, %s2716_s20  }
  0x36   :  { %s2717_s23 = smov [#allocation8]   ;;  %s2656_s27 = scalar_lea.hbm %s3003_s6, 1024 }
  0x37   :  { %s64_s24 = sshll.u32 %s2717_s23, 4  ;;  %p2657_p10 = scmp.ne.s32.totalorder %s3003_s6, %s2656_s27  ;;  %s65_s24 = int_to_ptr.vmem [resolvable:$true] %s64_s24 }
  0x38   :  { %p2660_p11 = scmp.lt.u32.totalorder %s2656_s27, %s3003_s6 }
  0x3a   :  { %p2662_p12 = pnand %p2660_p11, %p2657_p10 }
  0x3c   :  { %2665 = shalt.err (!%p2662_p12)
}
  0x3d   :  { %s2666_s12 = scalar_lea.vmem %s65_s24, 1024  ;;  %p2671_p0 = scmp.lt.s32.totalorder %s65_s24, %s65_s24 }
  0x3e   :  { %p2667_p13 = scmp.ne.s32.totalorder %s65_s24, %s2666_s12  ;;  %p2672_p1 = scmp.lt.s32.totalorder %s2666_s12, %s2666_s12 }
  0x40   :  { %p2673_p2 = por %p2672_p1, %p2671_p0 }
  0x42   :  { %p2674_p3 = pnand %p2673_p2, %p2667_p13 }
  0x44   :  { %2677 = shalt.err (!%p2674_p3)
}
  0x45   :  { %70 = dma.hbm_to_vmem [thread:$0]  %s3003_s6, 1024, %s65_s24, [#allocation9], %s2712_s4, %s2712_s4, %s2713_s28  }
  0x46   :  { %2700 = dma.done.wait [#allocation3], 256  }
  0x47   :  { %2701 = vsyncadd [#allocation3], 4294967040 }
  0x48   :  { %2702 = dma.done.wait [#allocation6], 21504  }
  0x49   :  { %2703 = vsyncadd [#allocation6], 4294945792 }
  0x4a   :  { %2704 = dma.done.wait [#allocation9], 1024  }
  0x4b   :  { %2705 = vsyncadd [#allocation9], 4294966272  ;;  %v2718_v0 = vmov 0   ;;  %v86_v1 = vld [vmem:[%s2997_s0] sm:$0xff]  ;;  %v87_v2 = vld [vmem:[%s2997_s0 + $0x8] sm:$0xff]  ;;  %v2719_v7 = vmov 0.0  }
  0x4c   :  { %2316 = vset.pattern.permute.xlu0 %v2718_v0  ;;  %389 = vmatprep.mubr.bf16.mxu1 %v2718_v0  ;;  %v2323_v3 = vld [vmem:[#allocation5 + $0x4] ss:$12 sps:$4 sm:$0xff]   ;;  %v2325_v4 = vld [vmem:[#allocation5] ss:$12 sps:$4 sm:$0xff]   ;;  %v2326_v5 = vld [vmem:[#allocation5 + $0x1c] ss:$12 sps:$4 sm:$0xff]  }
  0x4d   :  { %2322 = vset.pattern.permute.xlu1 %v2718_v0  ;;  %91 = vperm.xlu0 %2316, %v86_v1   ;;  %v2328_v6 = vld [vmem:[#allocation5 + $0x18] ss:$12 sps:$4 sm:$0xff]   ;;  %v2329_v8 = vld [vmem:[#allocation5 + $0x34] ss:$12 sps:$4 sm:$0xff]   ;;  %v2331_v9 = vld [vmem:[#allocation5 + $0x30] ss:$12 sps:$4 sm:$0xff]  }
  0x4e   :  { %357 = vmatprep.subr.bf16.mxu1 %v2323_v3  ;;  %2198 = vmatprep.subr.bf16.mxu0 %v2719_v7  ;;  %v2332_v10 = vld [vmem:[#allocation5 + $0x4c] ss:$12 sps:$4 sm:$0xff]   ;;  %v2334_v11 = vld [vmem:[#allocation5 + $0x48] ss:$12 sps:$4 sm:$0xff]   ;;  %vm2720_vm0 = vmmov 0   ;;  %vm124_vm1 = vcmask 261120  }
  0x4f   :  { %358 = vmatpush1.bf16.msra.mxu1 %v2325_v4  ;;  %v2347_v12 = vld [vmem:[#allocation2] sm:$0xff]   ;;  %2202 = vmatprep.mubr.msk.bf16.mxu0 %vm2720_vm0, %v2719_v7  ;;  %v2349_v14 = vld [vmem:[#allocation2 + $0x8] sm:$0xff]   ;;  %v2337_v15 = vld [vmem:[#allocation5 + $0x60] ss:$12 sps:$4 sm:$0xff]   ;;  %vm1645_vm2 = vcmask 523264   ;;  %s2722_s21 = smov [#allocation10]  }
  0x50   :  { %359 = vmatprep.subr.bf16.mxu1 %v2326_v5  ;;  %v2335_v13 = vld [vmem:[#allocation5 + $0x64] ss:$12 sps:$4 sm:$0xff]   ;;  %2199 = vmatpush3.bf16.msra.mxu0 %v2347_v12  ;;  %v2338_v16 = vld [vmem:[#allocation5 + $0x7c] ss:$12 sps:$4 sm:$0xff]   ;;  %v2341_v18 = vld [vmem:[#allocation5 + $0x94] ss:$12 sps:$4 sm:$0xff]  }
  0x51   :  { %96 = vperm.xlu0 %2316, %v87_v2   ;;  %2200 = vmatprep.subr.bf16.mxu0 %v2719_v7  ;;  %v2340_v17 = vld [vmem:[#allocation5 + $0x78] ss:$12 sps:$4 sm:$0xff]   ;;  %v2343_v19 = vld [vmem:[#allocation5 + $0x90] ss:$12 sps:$4 sm:$0xff]   ;;  %v2346_v21 = vld [vmem:[#allocation5 + $0xa8] ss:$12 sps:$4 sm:$0xff]  }
  0x52   :  { %v2344_v20 = vld [vmem:[#allocation5 + $0xac] ss:$12 sps:$4 sm:$0xff]   ;;  %v2839_v22 = vld [vmem:[%s2998_s1] sm:$0xff]   ;;  %v2360_v24 = vld [vmem:[#allocation7 + $0x4] ss:$24 sps:$4 sm:$0xff]   ;;  %s1960_s22 = sshll.u32 %s2722_s21, 4  ;;  %s1961_s22 = int_to_ptr.vmem [resolvable:$true] %s1960_s22 }
  0x53   :  { %360 = vmatpush1.bf16.msra.mxu1 %v2328_v6  ;;  %v2358_v23 = vld [vmem:[#allocation7] ss:$24 sps:$4 sm:$0xff]   ;;  %v2366_v25 = vld [vmem:[#allocation7 + $0x34] ss:$24 sps:$4 sm:$0xff]   ;;  %v2364_v26 = vld [vmem:[#allocation7 + $0x30] ss:$24 sps:$4 sm:$0xff]   ;;  %p2683_p5 = scmp.lt.s32.totalorder %s1961_s22, %s1961_s22 }
  0x54   :  { %361 = vmatprep.subr.bf16.mxu1 %v2329_v8  ;;  %2201 = vmatpush3.bf16.msra.mxu0 %v2349_v14  ;;  %v2372_v27 = vld [vmem:[#allocation7 + $0x64] ss:$24 sps:$4 sm:$0xff]   ;;  %v2370_v28 = vld [vmem:[#allocation7 + $0x60] ss:$24 sps:$4 sm:$0xff]   ;;  %v2378_v29 = vld [vmem:[#allocation7 + $0x94] ss:$24 sps:$4 sm:$0xff]  }
  0x55   :  { %2206 = vmatprep.subr.bf16.mxu0 %v2719_v7  ;;  %v2376_v30 = vld [vmem:[#allocation7 + $0x90] ss:$24 sps:$4 sm:$0xff]   ;;  %v2384_v31 = vld [vmem:[#allocation7 + $0xc4] ss:$24 sps:$4 sm:$0xff]   ;;  %v2382_v32 = vld [vmem:[#allocation7 + $0xc0] ss:$24 sps:$4 sm:$0xff]  }
  0x56   :  { %v2390_v33 = vld [vmem:[#allocation7 + $0xf4] ss:$24 sps:$4 sm:$0xff]   ;;  %v2388_v34 = vld [vmem:[#allocation7 + $0xf0] ss:$24 sps:$4 sm:$0xff]   ;;  %v2396_v35 = vld [vmem:[#allocation7 + $0x124] ss:$24 sps:$4 sm:$0xff]  }
  0x57   :  { %362 = vmatpush1.bf16.msra.mxu1 %v2331_v9  ;;  %v2394_v36 = vld [vmem:[#allocation7 + $0x120] ss:$24 sps:$4 sm:$0xff]   ;;  %v2402_v37 = vld [vmem:[#allocation7 + $0x154] ss:$24 sps:$4 sm:$0xff]   ;;  %v2400_v38 = vld [vmem:[#allocation7 + $0x150] ss:$24 sps:$4 sm:$0xff]  }
  0x58   :  { %363 = vmatprep.subr.bf16.mxu1 %v2332_v10  ;;  %v2408_v39 = vld [vmem:[#allocation7 + $0x184] ss:$24 sps:$4 sm:$0xff]   ;;  %v2406_v40 = vld [vmem:[#allocation7 + $0x180] ss:$24 sps:$4 sm:$0xff]   ;;  %v2414_v41 = vld [vmem:[#allocation7 + $0x1b4] ss:$24 sps:$4 sm:$0xff]  }
  0x59   :  { %v2412_v42 = vld [vmem:[#allocation7 + $0x1b0] ss:$24 sps:$4 sm:$0xff]   ;;  %v2420_v43 = vld [vmem:[#allocation7 + $0x1e4] ss:$24 sps:$4 sm:$0xff]   ;;  %v2418_v44 = vld [vmem:[#allocation7 + $0x1e0] ss:$24 sps:$4 sm:$0xff]  }
  0x5a   :  { %v2426_v45 = vld [vmem:[#allocation7 + $0x214] ss:$24 sps:$4 sm:$0xff]   ;;  %v2424_v46 = vld [vmem:[#allocation7 + $0x210] ss:$24 sps:$4 sm:$0xff]   ;;  %v2432_v47 = vld [vmem:[#allocation7 + $0x244] ss:$24 sps:$4 sm:$0xff]  }
  0x5b   :  { %364 = vmatpush1.bf16.msra.mxu1 %v2334_v11  ;;  %v2430_v48 = vld [vmem:[#allocation7 + $0x240] ss:$24 sps:$4 sm:$0xff]   ;;  %v2438_v49 = vld [vmem:[#allocation7 + $0x274] ss:$24 sps:$4 sm:$0xff]   ;;  %v2436_v50 = vld [vmem:[#allocation7 + $0x270] ss:$24 sps:$4 sm:$0xff]  }
  0x5c   :  { %365 = vmatprep.subr.bf16.mxu1 %v2335_v13  ;;  %v88_v51 = vld [vmem:[%s2999_s2] ss:$0 sm:$0xff]  ;;  %v2442_v52 = vld [vmem:[#allocation7 + $0x2a0] ss:$24 sps:$4 sm:$0xff]   ;;  %v2444_v53 = vld [vmem:[#allocation7 + $0x2a4] ss:$24 sps:$4 sm:$0xff]  }
  0x5d   :  { %v101_v56 = vld [vmem:[%s2999_s2 + $0x1] ss:$0 sm:$0xff]  ;;  %v2350_v63 = vld [vmem:[#allocation5 + $0x8] ss:$12 sps:$4 sm:$0xff]   ;;  %v2351_v2 = vld [vmem:[#allocation5 + $0x20] ss:$12 sps:$4 sm:$0xff]  }
  0x5e   :  { %v2352_v3 = vld [vmem:[#allocation5 + $0x38] ss:$12 sps:$4 sm:$0xff]   ;;  %v2353_v4 = vld [vmem:[#allocation5 + $0x50] ss:$12 sps:$4 sm:$0xff]   ;;  %v2354_v5 = vld [vmem:[#allocation5 + $0x68] ss:$12 sps:$4 sm:$0xff]  }
  0x5f   :  { %366 = vmatpush1.bf16.msra.mxu1 %v2337_v15  ;;  %v2355_v6 = vld [vmem:[#allocation5 + $0x80] ss:$12 sps:$4 sm:$0xff]   ;;  %v2356_v8 = vld [vmem:[#allocation5 + $0x98] ss:$12 sps:$4 sm:$0xff]   ;;  %v2357_v9 = vld [vmem:[#allocation5 + $0xb0] ss:$12 sps:$4 sm:$0xff]  }
  0x60   :  { %367 = vmatprep.subr.bf16.mxu1 %v2338_v16  ;;  %v2363_v10 = vld [vmem:[#allocation7 + $0xc] ss:$24 sps:$4 sm:$0xff]   ;;  %v2361_v11 = vld [vmem:[#allocation7 + $0x8] ss:$24 sps:$4 sm:$0xff]   ;;  %v2369_v12 = vld [vmem:[#allocation7 + $0x3c] ss:$24 sps:$4 sm:$0xff]  }
  0x61   :  { %v2367_v13 = vld [vmem:[#allocation7 + $0x38] ss:$24 sps:$4 sm:$0xff]   ;;  %v2375_v14 = vld [vmem:[#allocation7 + $0x6c] ss:$24 sps:$4 sm:$0xff]   ;;  %v2373_v15 = vld [vmem:[#allocation7 + $0x68] ss:$24 sps:$4 sm:$0xff]  }
  0x62   :  { %v2381_v16 = vld [vmem:[#allocation7 + $0x9c] ss:$24 sps:$4 sm:$0xff]   ;;  %vm2275_vm3 = vmpackc.low %vm1645_vm2, %vm1645_vm2  ;;  %vm1952_vm4 = vcmask 122880   ;;  %s2678_s23 = scalar_lea.vmem %s1961_s22, 16  ;;  %s2682_s24 = scalar_lea.vmem %s1961_s22, 32 }
  0x63   :  { %368 = vmatpush1.bf16.msra.mxu1 %v2340_v17  ;;  %v2379_v17 = vld [vmem:[#allocation7 + $0x98] ss:$24 sps:$4 sm:$0xff]   ;;  %p2679_p4 = scmp.ne.s32.totalorder %s1961_s22, %s2678_s23  ;;  %p2684_p6 = scmp.lt.s32.totalorder %s2682_s24, %s2678_s23 }
  0x64   :  { %369 = vmatprep.subr.bf16.mxu1 %v2341_v18  ;;  %v2387_v18 = vld [vmem:[#allocation7 + $0xcc] ss:$24 sps:$4 sm:$0xff]  }
  0x65   :  { %p2685_p7 = por %p2684_p6, %p2683_p5 }
  0x67   :  { %370 = vmatpush1.bf16.msra.mxu1 %v2343_v19  ;;  %v2385_v19 = vld [vmem:[#allocation7 + $0xc8] ss:$24 sps:$4 sm:$0xff]   ;;  %p2686_p8 = pnand %p2685_p7, %p2679_p4 }
  0x68   :  { %371 = vmatprep.subr.bf16.mxu1 %v2344_v20  ;;  %v2393_v20 = vld [vmem:[#allocation7 + $0xfc] ss:$24 sps:$4 sm:$0xff]  }
  0x6b   :  { %372 = vmatpush1.bf16.msra.mxu1 %v2346_v21  ;;  %v2391_v21 = vld [vmem:[#allocation7 + $0xf8] ss:$24 sps:$4 sm:$0xff]  }
  0x6c   :  { %1349 = vmatprep.subr.bf16.mxu1 %v2360_v24  ;;  %v2405_v24 = vld [vmem:[#allocation7 + $0x15c] ss:$24 sps:$4 sm:$0xff]  }
  0x6e   :  { %390 = vmatmul.mubr.bf16.vlgmr.msra.gmra.mrb[0].mxu1 %v2839_v22 }
  0x6f   :  { %1350 = vmatpush1.bf16.msra.mxu1 %v2358_v23  ;;  %v2397_v23 = vld [vmem:[#allocation7 + $0x128] ss:$24 sps:$4 sm:$0xff]  }
  0x70   :  { %1351 = vmatprep.subr.bf16.mxu1 %v2366_v25  ;;  %v2403_v25 = vld [vmem:[#allocation7 + $0x158] ss:$24 sps:$4 sm:$0xff]  }
  0x73   :  { %1352 = vmatpush1.bf16.msra.mxu1 %v2364_v26  ;;  %v2411_v26 = vld [vmem:[#allocation7 + $0x18c] ss:$24 sps:$4 sm:$0xff]  }
  0x74   :  { %1353 = vmatprep.subr.bf16.mxu1 %v2372_v27  ;;  %v2409_v27 = vld [vmem:[#allocation7 + $0x188] ss:$24 sps:$4 sm:$0xff]  }
  0x77   :  { %1354 = vmatpush1.bf16.msra.mxu1 %v2370_v28  ;;  %v2417_v28 = vld [vmem:[#allocation7 + $0x1bc] ss:$24 sps:$4 sm:$0xff]  }
  0x78   :  { %1355 = vmatprep.subr.bf16.mxu1 %v2378_v29  ;;  %v2415_v29 = vld [vmem:[#allocation7 + $0x1b8] ss:$24 sps:$4 sm:$0xff]  }
  0x7b   :  { %1356 = vmatpush1.bf16.msra.mxu1 %v2376_v30  ;;  %v2423_v30 = vld [vmem:[#allocation7 + $0x1ec] ss:$24 sps:$4 sm:$0xff]  }
  0x7c   :  { %1357 = vmatprep.subr.bf16.mxu1 %v2384_v31  ;;  %v2421_v31 = vld [vmem:[#allocation7 + $0x1e8] ss:$24 sps:$4 sm:$0xff]  }
  0x7f   :  { %1358 = vmatpush1.bf16.msra.mxu1 %v2382_v32  ;;  %v2429_v32 = vld [vmem:[#allocation7 + $0x21c] ss:$24 sps:$4 sm:$0xff]  }
  0x80   :  { %1359 = vmatprep.subr.bf16.mxu1 %v2390_v33  ;;  %v2427_v33 = vld [vmem:[#allocation7 + $0x218] ss:$24 sps:$4 sm:$0xff]  }
  0x83   :  { %1360 = vmatpush1.bf16.msra.mxu1 %v2388_v34  ;;  %v2435_v34 = vld [vmem:[#allocation7 + $0x24c] ss:$24 sps:$4 sm:$0xff]  }
  0x84   :  { %1361 = vmatprep.subr.bf16.mxu1 %v2396_v35  ;;  %v2433_v35 = vld [vmem:[#allocation7 + $0x248] ss:$24 sps:$4 sm:$0xff]  }
  0x87   :  { %1362 = vmatpush1.bf16.msra.mxu1 %v2394_v36  ;;  %v2441_v36 = vld [vmem:[#allocation7 + $0x27c] ss:$24 sps:$4 sm:$0xff]  }
  0x88   :  { %1363 = vmatprep.subr.bf16.mxu1 %v2402_v37  ;;  %v2439_v37 = vld [vmem:[#allocation7 + $0x278] ss:$24 sps:$4 sm:$0xff]  }
  0x8b   :  { %1364 = vmatpush1.bf16.msra.mxu1 %v2400_v38  ;;  %v2447_v38 = vld [vmem:[#allocation7 + $0x2ac] ss:$24 sps:$4 sm:$0xff]  }
  0x8c   :  { %1365 = vmatprep.subr.bf16.mxu1 %v2408_v39  ;;  %v2450_v39 = vld [vmem:[#allocation7 + $0x2d4] ss:$24 sps:$4 sm:$0xff]  }
  0x8f   :  { %1366 = vmatpush1.bf16.msra.mxu1 %v2406_v40  ;;  %v2448_v40 = vld [vmem:[#allocation7 + $0x2d0] ss:$24 sps:$4 sm:$0xff]  }
  0x90   :  { %1367 = vmatprep.subr.bf16.mxu1 %v2414_v41  ;;  %v2445_v41 = vld [vmem:[#allocation7 + $0x2a8] ss:$24 sps:$4 sm:$0xff]  }
  0x93   :  { %1368 = vmatpush1.bf16.msra.mxu1 %v2412_v42  ;;  %v2453_v42 = vld [vmem:[#allocation7 + $0x2dc] ss:$24 sps:$4 sm:$0xff]  }
  0x94   :  { %1369 = vmatprep.subr.bf16.mxu1 %v2420_v43  ;;  %v2456_v43 = vld [vmem:[#allocation7 + $0x304] ss:$24 sps:$4 sm:$0xff]  }
  0x97   :  { %1370 = vmatpush1.bf16.msra.mxu1 %v2418_v44  ;;  %v2451_v44 = vld [vmem:[#allocation7 + $0x2d8] ss:$24 sps:$4 sm:$0xff]  }
  0x98   :  { %1371 = vmatprep.subr.bf16.mxu1 %v2426_v45  ;;  %v208_v45 = vlaneseq }
  0x9b   :  { %1372 = vmatpush1.bf16.msra.mxu1 %v2424_v46  ;;  %v2459_v46 = vld [vmem:[#allocation7 + $0x30c] ss:$24 sps:$4 sm:$0xff]  }
  0x9c   :  { %1373 = vmatprep.subr.bf16.mxu1 %v2432_v47  ;;  %v2858_v47 = vshrl.u32 %v208_v45, 7 }
  0x9f   :  { %1374 = vmatpush1.bf16.msra.mxu1 %v2430_v48  ;;  %v210_v48 = vsub.s32 0, %v2858_v47 }
  0xa0   :  { %1375 = vmatprep.subr.bf16.mxu1 %v2438_v49  ;;  %v2864_v49 = vld [vmem:[%s2999_s2 + $0x3] ss:$8 sm:$0x7] }
  0xa3   :  { %1376 = vmatpush1.bf16.msra.mxu1 %v2436_v50  ;;  %v214_v50 = vsub.s32 1, %v2858_v47 }
  0xa4   :  { %1377 = vmatprep.subr.bf16.mxu1 %v2444_v53 }
  0xa7   :  { %1378 = vmatpush1.bf16.msra.mxu1 %v2442_v52  ;;  %v215_v52 = vrot.slane %v2864_v49, %v214_v50 }
  0xa8   :  { %1379 = vmatprep.subr.bf16.mxu1 %v2450_v39 }
  0xab   :  { %1380 = vmatpush1.bf16.msra.mxu1 %v2448_v40  ;;  %v218_v40 = vsub.s32 2, %v2858_v47 }
  0xac   :  { %1392 = vmatprep.subr.bf16.mxu1 %v2456_v43 }
  0xcc   :  { %v92_v54 = vpop.permute.xlu0 %91 }
  0xcd   :  { %v99_v55 = vmul.f32 %v92_v54, %v88_v51 }
  0xcf   :  { %v102_v58 = vadd.f32 %v101_v56, %v99_v55 }
  0xd0   :  { %v97_v57 = vpop.permute.xlu0 %96 }
  0xd1   :  { %v100_v59 = vmul.f32 %v97_v57, %v88_v51  ;;  %v104_v61 = vmax.f32 %v102_v58, 0.0  ;;  %v211_v51 = vrot.slane %v2864_v49, %v210_v48 }
  0xd3   :  { %v103_v60 = vadd.f32 %v101_v56, %v100_v59 }
  0xd5   :  { %v105_v62 = vmax.f32 %v103_v60, 0.0 }
  0xd7   :  { %v106_v1 = vpack.c.bf16 %v105_v62, %v104_v61 }
  0xd9   :  { %2203 = vmatmul.mubr.msk.bf16.vlgmr.msra.gmra.mrb[0].mxu0 %vm124_vm1, %v106_v1 }
  0xda   :  { %2207 = vmatpush3.bf16.msra.mxu0 %v2350_v63  ;;  %2222 = vmatprep.mubr.msk.bf16.mxu0 %vm2720_vm0, %v2719_v7 }
  0xdb   :  { %2208 = vmatprep.subr.bf16.mxu0 %v2719_v7 }
  0xde   :  { %2209 = vmatpush3.bf16.msra.mxu0 %v2351_v2 }
  0xdf   :  { %2210 = vmatprep.subr.bf16.mxu0 %v2719_v7 }
  0xe2   :  { %2211 = vmatpush3.bf16.msra.mxu0 %v2352_v3 }
  0xe3   :  { %2212 = vmatprep.subr.bf16.mxu0 %v2719_v7 }
  0xe6   :  { %2213 = vmatpush3.bf16.msra.mxu0 %v2353_v4  ;;  %v2454_v4 = vld [vmem:[#allocation7 + $0x300] ss:$24 sps:$4 sm:$0xff]  }
  0xe7   :  { %2214 = vmatprep.subr.bf16.mxu0 %v2719_v7 }
  0xea   :  { %2215 = vmatpush3.bf16.msra.mxu0 %v2354_v5  ;;  %v2457_v5 = vld [vmem:[#allocation7 + $0x308] ss:$24 sps:$4 sm:$0xff]  }
  0xeb   :  { %2216 = vmatprep.subr.bf16.mxu0 %v2719_v7 }
  0xee   :  { %2217 = vmatpush3.bf16.msra.mxu0 %v2355_v6  ;;  %v2462_v6 = vld [vmem:[#allocation7 + $0x334] ss:$24 sps:$4 sm:$0xff]  }
  0xef   :  { %2218 = vmatprep.subr.bf16.mxu0 %v2719_v7 }
  0xf2   :  { %2219 = vmatpush3.bf16.msra.mxu0 %v2356_v8  ;;  %v2465_v8 = vld [vmem:[#allocation7 + $0x33c] ss:$24 sps:$4 sm:$0xff]  }
  0xf3   :  { %2220 = vmatprep.subr.bf16.mxu0 %v2719_v7 }
  0xf6   :  { %2221 = vmatpush3.bf16.msra.mxu0 %v2357_v9  ;;  %v2460_v9 = vld [vmem:[#allocation7 + $0x330] ss:$24 sps:$4 sm:$0xff]  }
  0xf7   :  { %1435 = vmatprep.subr.bf16.mxu0 %v2363_v10  ;;  %v2463_v10 = vld [vmem:[#allocation7 + $0x338] ss:$24 sps:$4 sm:$0xff]  }
  0xf9   :  { %2223 = vmatmul.mubr.bf16.vlgmr.msra.gmra.mrb[4].mxu0 %v2839_v22  ;;  %v2399_v22 = vld [vmem:[#allocation7 + $0x12c] ss:$24 sps:$4 sm:$0xff]  }
  0xfa   :  { %1436 = vmatpush1.bf16.msra.mxu0 %v2361_v11  ;;  %v2468_v11 = vld [vmem:[#allocation7 + $0x364] ss:$24 sps:$4 sm:$0xff]  }
  0xfb   :  { %1437 = vmatprep.subr.bf16.mxu0 %v2369_v12  ;;  %v2471_v12 = vld [vmem:[#allocation7 + $0x36c] ss:$24 sps:$4 sm:$0xff]  }
  0xfe   :  { %1438 = vmatpush1.bf16.msra.mxu0 %v2367_v13  ;;  %v2466_v13 = vld [vmem:[#allocation7 + $0x360] ss:$24 sps:$4 sm:$0xff]  }
  0xff   :  { %1439 = vmatprep.subr.bf16.mxu0 %v2375_v14  ;;  %v2469_v14 = vld [vmem:[#allocation7 + $0x368] ss:$24 sps:$4 sm:$0xff]  }
 0x102   :  { %1440 = vmatpush1.bf16.msra.mxu0 %v2373_v15  ;;  %v2474_v15 = vld [vmem:[#allocation7 + $0x394] ss:$24 sps:$4 sm:$0xff]  }
 0x103   :  { %1441 = vmatprep.subr.bf16.mxu0 %v2381_v16  ;;  %v2477_v16 = vld [vmem:[#allocation7 + $0x39c] ss:$24 sps:$4 sm:$0xff]  }
 0x106   :  { %1442 = vmatpush1.bf16.msra.mxu0 %v2379_v17  ;;  %v2472_v17 = vld [vmem:[#allocation7 + $0x390] ss:$24 sps:$4 sm:$0xff]  }
 0x107   :  { %1443 = vmatprep.subr.bf16.mxu0 %v2387_v18  ;;  %v2475_v18 = vld [vmem:[#allocation7 + $0x398] ss:$24 sps:$4 sm:$0xff]  }
 0x10a   :  { %1444 = vmatpush1.bf16.msra.mxu0 %v2385_v19  ;;  %v2480_v19 = vld [vmem:[#allocation7 + $0x3c4] ss:$24 sps:$4 sm:$0xff]  }
 0x10b   :  { %1445 = vmatprep.subr.bf16.mxu0 %v2393_v20  ;;  %v2483_v20 = vld [vmem:[#allocation7 + $0x3cc] ss:$24 sps:$4 sm:$0xff]  }
 0x10e   :  { %1446 = vmatpush1.bf16.msra.mxu0 %v2391_v21  ;;  %v2478_v21 = vld [vmem:[#allocation7 + $0x3c0] ss:$24 sps:$4 sm:$0xff]  }
 0x10f   :  { %1447 = vmatprep.subr.bf16.mxu0 %v2399_v22  ;;  %v2481_v22 = vld [vmem:[#allocation7 + $0x3c8] ss:$24 sps:$4 sm:$0xff]  }
 0x112   :  { %1448 = vmatpush1.bf16.msra.mxu0 %v2397_v23  ;;  %v2486_v23 = vld [vmem:[#allocation7 + $0x3f4] ss:$24 sps:$4 sm:$0xff]  }
 0x113   :  { %1449 = vmatprep.subr.bf16.mxu0 %v2405_v24  ;;  %v2489_v24 = vld [vmem:[#allocation7 + $0x3fc] ss:$24 sps:$4 sm:$0xff]  }
 0x116   :  { %1450 = vmatpush1.bf16.msra.mxu0 %v2403_v25  ;;  %v2484_v25 = vld [vmem:[#allocation7 + $0x3f0] ss:$24 sps:$4 sm:$0xff]  }
 0x117   :  { %1451 = vmatprep.subr.bf16.mxu0 %v2411_v26  ;;  %v2487_v26 = vld [vmem:[#allocation7 + $0x3f8] ss:$24 sps:$4 sm:$0xff]  }
 0x11a   :  { %1452 = vmatpush1.bf16.msra.mxu0 %v2409_v27  ;;  %v2492_v27 = vld [vmem:[#allocation7 + $0x424] ss:$24 sps:$4 sm:$0xff]  }
 0x11b   :  { %1453 = vmatprep.subr.bf16.mxu0 %v2417_v28  ;;  %v2495_v28 = vld [vmem:[#allocation7 + $0x42c] ss:$24 sps:$4 sm:$0xff]  }
 0x11e   :  { %1454 = vmatpush1.bf16.msra.mxu0 %v2415_v29  ;;  %v2490_v29 = vld [vmem:[#allocation7 + $0x420] ss:$24 sps:$4 sm:$0xff]  }
 0x11f   :  { %1455 = vmatprep.subr.bf16.mxu0 %v2423_v30  ;;  %v2493_v30 = vld [vmem:[#allocation7 + $0x428] ss:$24 sps:$4 sm:$0xff]  }
 0x122   :  { %1456 = vmatpush1.bf16.msra.mxu0 %v2421_v31  ;;  %v2498_v31 = vld [vmem:[#allocation7 + $0x454] ss:$24 sps:$4 sm:$0xff]  }
 0x123   :  { %1457 = vmatprep.subr.bf16.mxu0 %v2429_v32  ;;  %v2501_v32 = vld [vmem:[#allocation7 + $0x45c] ss:$24 sps:$4 sm:$0xff]  }
 0x126   :  { %1458 = vmatpush1.bf16.msra.mxu0 %v2427_v33  ;;  %v2496_v33 = vld [vmem:[#allocation7 + $0x450] ss:$24 sps:$4 sm:$0xff]  }
 0x127   :  { %1459 = vmatprep.subr.bf16.mxu0 %v2435_v34  ;;  %v2499_v34 = vld [vmem:[#allocation7 + $0x458] ss:$24 sps:$4 sm:$0xff]  }
 0x12a   :  { %1460 = vmatpush1.bf16.msra.mxu0 %v2433_v35  ;;  %v2504_v35 = vld [vmem:[#allocation7 + $0x14] ss:$24 sps:$4 sm:$0xff]  }
 0x12b   :  { %1461 = vmatprep.subr.bf16.mxu0 %v2441_v36 }
 0x12e   :  { %1462 = vmatpush1.bf16.msra.mxu0 %v2439_v37 }
 0x12f   :  { %1463 = vmatprep.subr.bf16.mxu0 %v2447_v38 }
 0x132   :  { %1464 = vmatpush1.bf16.msra.mxu0 %v2445_v41  ;;  %v219_v41 = vrot.slane %v2864_v49, %v218_v40  ;;  %v2505_v49 = vld [vmem:[#allocation7 + $0x40] ss:$24 sps:$4 sm:$0xff]  }
 0x133   :  { %1465 = vmatprep.subr.bf16.mxu0 %v2453_v42 }
 0x136   :  { %1466 = vmatpush1.bf16.msra.mxu0 %v2451_v44 }
 0x137   :  { %1478 = vmatprep.subr.bf16.mxu0 %v2459_v46 }
 0x141   :  { %v391_v53 = vpop.f32.mrb[0].mxu1 }
 0x142   :  { %v392_v54 = vadd.f32 %v391_v53, %v211_v51  ;;  %v393_v55 = vpop.f32.mrb[1].mxu1 }
 0x143   :  { %v394_v56 = vadd.f32 %v393_v55, %v215_v52  ;;  %v395_v57 = vpop.f32.mrb[2].mxu1 }
 0x144   :  { %v441_v58 = vmax.f32 %v392_v54, 0.0  ;;  %v396_v59 = vadd.f32 %v395_v57, %v211_v51  ;;  %v397_v60 = vpop.f32.mrb[3].mxu1  ;;  %v2502_v54 = vld [vmem:[#allocation7 + $0x10] ss:$24 sps:$4 sm:$0xff]   ;;  %v2510_v57 = vld [vmem:[#allocation7 + $0x74] ss:$24 sps:$4 sm:$0xff]  }
 0x145   :  { %v442_v61 = vmax.f32 %v394_v56, 0.0  ;;  %v398_v62 = vadd.f32 %v397_v60, %v215_v52  ;;  %v2507_v56 = vld [vmem:[#allocation7 + $0x44] ss:$24 sps:$4 sm:$0xff]   ;;  %v2511_v60 = vld [vmem:[#allocation7 + $0xa0] ss:$24 sps:$4 sm:$0xff]  }
 0x146   :  { %v444_v63 = vmax.f32 %v396_v59, 0.0  ;;  %v2513_v59 = vld [vmem:[#allocation7 + $0xa4] ss:$24 sps:$4 sm:$0xff]  }
 0x147   :  { %v445_v1 = vmax.f32 %v398_v62, 0.0  ;;  %v2514_v62 = vld [vmem:[#allocation7 + $0xd0] ss:$24 sps:$4 sm:$0xff]  }
 0x148   :  { %v2873_v2 = vpack.c.bf16 %v444_v63, %v441_v58  ;;  %v2508_v58 = vld [vmem:[#allocation7 + $0x70] ss:$24 sps:$4 sm:$0xff]   ;;  %v2519_v63 = vld [vmem:[#allocation7 + $0x104] ss:$24 sps:$4 sm:$0xff]  }
 0x149   :  { %v2875_v3 = vpack.c.bf16 %v445_v1, %v442_v61  ;;  %v2516_v61 = vld [vmem:[#allocation7 + $0xd4] ss:$24 sps:$4 sm:$0xff]   ;;  %v2517_v1 = vld [vmem:[#allocation7 + $0x100] ss:$24 sps:$4 sm:$0xff]  }
 0x14b   :  { %1381 = vmatprep.mubr.bf16.mxu1 %v2875_v3  ;;  %1467 = vmatprep.mubr.bf16.mxu0 %v2875_v3 }
 0x14c   :  { %1382 = vmatmul.mubr.bf16.vlgmr.msra.gmra.mrb[4].mxu1 %v2873_v2  ;;  %1468 = vmatmul.mubr.bf16.vlgmr.msra.gmra.mrb[8].mxu0 %v2873_v2 }
 0x14d   :  { %1393 = vmatpush1.bf16.msra.mxu1 %v2454_v4  ;;  %1479 = vmatpush1.bf16.msra.mxu0 %v2457_v5  ;;  %v2520_v4 = vld [vmem:[#allocation7 + $0x130] ss:$24 sps:$4 sm:$0xff]   ;;  %v2525_v5 = vld [vmem:[#allocation7 + $0x164] ss:$24 sps:$4 sm:$0xff]  }
 0x14e   :  { %1394 = vmatprep.subr.bf16.mxu1 %v2462_v6  ;;  %1480 = vmatprep.subr.bf16.mxu0 %v2465_v8  ;;  %v2523_v6 = vld [vmem:[#allocation7 + $0x160] ss:$24 sps:$4 sm:$0xff]   ;;  %v2528_v8 = vld [vmem:[#allocation7 + $0x194] ss:$24 sps:$4 sm:$0xff]  }
 0x14f   :  { %1424 = vmatprep.mubr.bf16.mxu1 %v2718_v0  ;;  %1510 = vmatprep.mubr.bf16.mxu0 %v2718_v0 }
 0x151   :  { %1395 = vmatpush1.bf16.msra.mxu1 %v2460_v9  ;;  %1481 = vmatpush1.bf16.msra.mxu0 %v2463_v10  ;;  %v2526_v9 = vld [vmem:[#allocation7 + $0x190] ss:$24 sps:$4 sm:$0xff]   ;;  %v2531_v10 = vld [vmem:[#allocation7 + $0x1c4] ss:$24 sps:$4 sm:$0xff]  }
 0x152   :  { %1396 = vmatprep.subr.bf16.mxu1 %v2468_v11  ;;  %1482 = vmatprep.subr.bf16.mxu0 %v2471_v12  ;;  %v2529_v11 = vld [vmem:[#allocation7 + $0x1c0] ss:$24 sps:$4 sm:$0xff]   ;;  %v2534_v12 = vld [vmem:[#allocation7 + $0x1f4] ss:$24 sps:$4 sm:$0xff]  }
 0x155   :  { %1397 = vmatpush1.bf16.msra.mxu1 %v2466_v13  ;;  %1483 = vmatpush1.bf16.msra.mxu0 %v2469_v14  ;;  %v2532_v13 = vld [vmem:[#allocation7 + $0x1f0] ss:$24 sps:$4 sm:$0xff]   ;;  %v2537_v14 = vld [vmem:[#allocation7 + $0x224] ss:$24 sps:$4 sm:$0xff]  }
 0x156   :  { %1398 = vmatprep.subr.bf16.mxu1 %v2474_v15  ;;  %1484 = vmatprep.subr.bf16.mxu0 %v2477_v16  ;;  %v2535_v15 = vld [vmem:[#allocation7 + $0x220] ss:$24 sps:$4 sm:$0xff]   ;;  %v2540_v16 = vld [vmem:[#allocation7 + $0x254] ss:$24 sps:$4 sm:$0xff]  }
 0x159   :  { %1399 = vmatpush1.bf16.msra.mxu1 %v2472_v17  ;;  %1485 = vmatpush1.bf16.msra.mxu0 %v2475_v18  ;;  %v2538_v17 = vld [vmem:[#allocation7 + $0x250] ss:$24 sps:$4 sm:$0xff]   ;;  %v2543_v18 = vld [vmem:[#allocation7 + $0x284] ss:$24 sps:$4 sm:$0xff]  }
 0x15a   :  { %1400 = vmatprep.subr.bf16.mxu1 %v2480_v19  ;;  %1486 = vmatprep.subr.bf16.mxu0 %v2483_v20  ;;  %v2541_v19 = vld [vmem:[#allocation7 + $0x280] ss:$24 sps:$4 sm:$0xff]   ;;  %v2546_v20 = vld [vmem:[#allocation7 + $0x2b4] ss:$24 sps:$4 sm:$0xff]  }
 0x15d   :  { %1401 = vmatpush1.bf16.msra.mxu1 %v2478_v21  ;;  %1487 = vmatpush1.bf16.msra.mxu0 %v2481_v22  ;;  %v2544_v21 = vld [vmem:[#allocation7 + $0x2b0] ss:$24 sps:$4 sm:$0xff]   ;;  %v2549_v22 = vld [vmem:[#allocation7 + $0x2e4] ss:$24 sps:$4 sm:$0xff]  }
 0x15e   :  { %1402 = vmatprep.subr.bf16.mxu1 %v2486_v23  ;;  %1488 = vmatprep.subr.bf16.mxu0 %v2489_v24  ;;  %v2547_v23 = vld [vmem:[#allocation7 + $0x2e0] ss:$24 sps:$4 sm:$0xff]   ;;  %v2552_v24 = vld [vmem:[#allocation7 + $0x314] ss:$24 sps:$4 sm:$0xff]  }
 0x161   :  { %1403 = vmatpush1.bf16.msra.mxu1 %v2484_v25  ;;  %1489 = vmatpush1.bf16.msra.mxu0 %v2487_v26  ;;  %v2550_v25 = vld [vmem:[#allocation7 + $0x310] ss:$24 sps:$4 sm:$0xff]   ;;  %v2555_v26 = vld [vmem:[#allocation7 + $0x344] ss:$24 sps:$4 sm:$0xff]  }
 0x162   :  { %1404 = vmatprep.subr.bf16.mxu1 %v2492_v27  ;;  %1490 = vmatprep.subr.bf16.mxu0 %v2495_v28  ;;  %v2553_v27 = vld [vmem:[#allocation7 + $0x340] ss:$24 sps:$4 sm:$0xff]   ;;  %v2558_v28 = vld [vmem:[#allocation7 + $0x374] ss:$24 sps:$4 sm:$0xff]  }
 0x165   :  { %1405 = vmatpush1.bf16.msra.mxu1 %v2490_v29  ;;  %1491 = vmatpush1.bf16.msra.mxu0 %v2493_v30  ;;  %v2556_v29 = vld [vmem:[#allocation7 + $0x370] ss:$24 sps:$4 sm:$0xff]   ;;  %v2561_v30 = vld [vmem:[#allocation7 + $0x3a4] ss:$24 sps:$4 sm:$0xff]  }
 0x166   :  { %1406 = vmatprep.subr.bf16.mxu1 %v2498_v31  ;;  %1492 = vmatprep.subr.bf16.mxu0 %v2501_v32  ;;  %v2559_v31 = vld [vmem:[#allocation7 + $0x3a0] ss:$24 sps:$4 sm:$0xff]   ;;  %v2564_v32 = vld [vmem:[#allocation7 + $0x3d4] ss:$24 sps:$4 sm:$0xff]  }
 0x169   :  { %1407 = vmatpush1.bf16.msra.mxu1 %v2496_v33  ;;  %1493 = vmatpush1.bf16.msra.mxu0 %v2499_v34  ;;  %v2562_v33 = vld [vmem:[#allocation7 + $0x3d0] ss:$24 sps:$4 sm:$0xff]   ;;  %v2567_v34 = vld [vmem:[#allocation7 + $0x404] ss:$24 sps:$4 sm:$0xff]  }
 0x16a   :  { %1521 = vmatprep.subr.bf16.mxu1 %v2504_v35  ;;  %2226 = vmatprep.subr.bf16.mxu0 %v2719_v7  ;;  %v2570_v35 = vld [vmem:[#allocation7 + $0x434] ss:$24 sps:$4 sm:$0xff]  }
 0x1ac   :  { %v2884_v36 = vpop.f32.mrb[0].mxu0 }
 0x1ad   :  { %v2204_v37 = vpop.f32.mrb[1].mxu0 }
 0x1ae   :  { %v2886_v38 = vpop.f32.mrb[2].mxu0  ;;  %v2573_v37 = vld [vmem:[#allocation7 + $0x464] ss:$24 sps:$4 sm:$0xff]  }
 0x1af   :  { %v2205_v39 = vpop.f32.mrb[3].mxu0 }
 0x1b0   :  { %v2571_v39 = vld [vmem:[#allocation7 + $0x460] ss:$24 sps:$4 sm:$0xff]  }
 0x1cc   :  { %v434_v42 = vpop.f32.mrb[4].mxu0 }
 0x1cd   :  { %v435_v43 = vadd.f32 %v434_v42, %v219_v41  ;;  %v2224_v44 = vpop.f32.mrb[5].mxu0  ;;  %v2001_v42 = vld [vmem:[%s2999_s2 + $0x4] ss:$8 sm:$0x30] }
 0x1ce   :  { %v437_v45 = vpop.f32.mrb[6].mxu0  ;;  %v613_v44 = vsub.s32 3, %v2858_v47 }
 0x1cf   :  { %v438_v46 = vadd.f32 %v437_v45, %v219_v41  ;;  %v2225_v51 = vpop.f32.mrb[7].mxu0  ;;  %v443_v52 = vmax.f32 %v435_v43, 0.0  ;;  %v2000_v41 = vld [vmem:[%s2999_s2 + $0x4] ss:$8 sm:$0xf] }
 0x1d0   :  { %v597_v43 = vor.u32 %v2001_v42, %v2000_v41  ;;  %v2577_v41 = vld [vmem:[#allocation8 + $0x18] sm:$0xff]   ;;  %v2578_v42 = vld [vmem:[#allocation8 + $0x20] sm:$0xff]  }
 0x1d1   :  { %v446_v53 = vmax.f32 %v438_v46, 0.0 }
 0x1d2   :  { %v602_v45 = vrot.slane %v597_v43, %v210_v48  ;;  %v610_v46 = vrot.slane %v597_v43, %v218_v40  ;;  %v606_v51 = vrot.slane %v597_v43, %v214_v50 }
 0x1d3   :  { %v2892_v55 = vpack.c.bf16 %v446_v53, %v443_v52  ;;  %v614_v52 = vrot.slane %v597_v43, %v613_v44  ;;  %v2580_v44 = vld [vmem:[#allocation8 + $0x30] sm:$0xff]  }
 0x1d5   :  { %1425 = vmatmul.mubr.bf16.vlgmr.msra.gmra.mrb[4].mxu1 %v2892_v55  ;;  %1511 = vmatmul.mubr.bf16.vlgmr.msra.gmra.mrb[8].mxu0 %v2892_v55 }
 0x1d6   :  { %1522 = vmatpush1.bf16.msra.mxu1 %v2502_v54  ;;  %1553 = vmatprep.mubr.bf16.mxu1 %v2875_v3  ;;  %v2522_v3 = vld [vmem:[#allocation7 + $0x134] ss:$24 sps:$4 sm:$0xff]  }
 0x1d7   :  { %1523 = vmatprep.subr.bf16.mxu1 %v2507_v56  ;;  %2242 = vmatprep.mubr.msk.bf16.mxu0 %vm2720_vm0, %v2719_v7 }
 0x1da   :  { %1524 = vmatpush1.bf16.msra.mxu1 %v2505_v49 }
 0x1db   :  { %1525 = vmatprep.subr.bf16.mxu1 %v2510_v57 }
 0x1de   :  { %1526 = vmatpush1.bf16.msra.mxu1 %v2508_v58 }
 0x1df   :  { %1527 = vmatprep.subr.bf16.mxu1 %v2513_v59 }
 0x1e2   :  { %1528 = vmatpush1.bf16.msra.mxu1 %v2511_v60 }
 0x1e3   :  { %1529 = vmatprep.subr.bf16.mxu1 %v2516_v61 }
 0x1e6   :  { %1530 = vmatpush1.bf16.msra.mxu1 %v2514_v62 }
 0x1e7   :  { %1531 = vmatprep.subr.bf16.mxu1 %v2519_v63 }
 0x1ea   :  { %1532 = vmatpush1.bf16.msra.mxu1 %v2517_v1 }
 0x1eb   :  { %1533 = vmatprep.subr.bf16.mxu1 %v2522_v3 }
 0x1ee   :  { %1534 = vmatpush1.bf16.msra.mxu1 %v2520_v4 }
 0x1ef   :  { %1535 = vmatprep.subr.bf16.mxu1 %v2525_v5 }
 0x1f2   :  { %1536 = vmatpush1.bf16.msra.mxu1 %v2523_v6 }
 0x1f3   :  { %1537 = vmatprep.subr.bf16.mxu1 %v2528_v8 }
 0x1f6   :  { %1538 = vmatpush1.bf16.msra.mxu1 %v2526_v9 }
 0x1f7   :  { %1539 = vmatprep.subr.bf16.mxu1 %v2531_v10 }
 0x1fa   :  { %1540 = vmatpush1.bf16.msra.mxu1 %v2529_v11 }
 0x1fb   :  { %1541 = vmatprep.subr.bf16.mxu1 %v2534_v12 }
 0x1fe   :  { %1542 = vmatpush1.bf16.msra.mxu1 %v2532_v13 }
 0x1ff   :  { %1543 = vmatprep.subr.bf16.mxu1 %v2537_v14 }
 0x202   :  { %1544 = vmatpush1.bf16.msra.mxu1 %v2535_v15 }
 0x203   :  { %1545 = vmatprep.subr.bf16.mxu1 %v2540_v16 }
 0x206   :  { %1546 = vmatpush1.bf16.msra.mxu1 %v2538_v17 }
 0x207   :  { %1547 = vmatprep.subr.bf16.mxu1 %v2543_v18  ;;  %v617_v18 = vsub.s32 4, %v2858_v47 }
 0x20a   :  { %1548 = vmatpush1.bf16.msra.mxu1 %v2541_v19  ;;  %v621_v19 = vsub.s32 5, %v2858_v47  ;;  %v2575_v47 = vld [vmem:[#allocation8 + $0x8] sm:$0xff]  }
 0x20b   :  { %1549 = vmatprep.subr.bf16.mxu1 %v2546_v20  ;;  %v618_v20 = vrot.slane %v597_v43, %v617_v18 }
 0x20e   :  { %1550 = vmatpush1.bf16.msra.mxu1 %v2544_v21  ;;  %v622_v21 = vrot.slane %v597_v43, %v621_v19  ;;  %v2579_v43 = vld [vmem:[#allocation8 + $0x28] sm:$0xff]   ;;  %v2721_v19 = vmov 0.0|0.0  }
 0x20f   :  { %1551 = vmatprep.subr.bf16.mxu1 %v2549_v22 }
 0x212   :  { %1552 = vmatpush1.bf16.msra.mxu1 %v2547_v23 }
 0x213   :  { %1564 = vmatprep.subr.bf16.mxu1 %v2552_v24 }
 0x215   :  { %1554 = vmatmul.mubr.bf16.vlgmr.msra.gmra.mrb[8].mxu1 %v2873_v2  ;;  %v2565_v2 = vld [vmem:[#allocation7 + $0x400] ss:$24 sps:$4 sm:$0xff]  }
 0x216   :  { %1565 = vmatpush1.bf16.msra.mxu1 %v2550_v25  ;;  %1596 = vmatprep.mubr.bf16.mxu1 %v2718_v0  ;;  %v2568_v0 = vld [vmem:[#allocation7 + $0x430] ss:$24 sps:$4 sm:$0xff]  }
 0x217   :  { %1566 = vmatprep.subr.bf16.mxu1 %v2555_v26 }
 0x21a   :  { %1567 = vmatpush1.bf16.msra.mxu1 %v2553_v27 }
 0x21b   :  { %1568 = vmatprep.subr.bf16.mxu1 %v2558_v28 }
 0x21e   :  { %1569 = vmatpush1.bf16.msra.mxu1 %v2556_v29 }
 0x21f   :  { %1570 = vmatprep.subr.bf16.mxu1 %v2561_v30 }
 0x222   :  { %1571 = vmatpush1.bf16.msra.mxu1 %v2559_v31 }
 0x223   :  { %1572 = vmatprep.subr.bf16.mxu1 %v2564_v32 }
 0x226   :  { %1573 = vmatpush1.bf16.msra.mxu1 %v2562_v33 }
 0x227   :  { %1574 = vmatprep.subr.bf16.mxu1 %v2567_v34 }
 0x22a   :  { %1575 = vmatpush1.bf16.msra.mxu1 %v2565_v2  ;;  %v2574_v2 = vld [vmem:[#allocation8] sm:$0xff]  }
 0x22b   :  { %1576 = vmatprep.subr.bf16.mxu1 %v2570_v35  ;;  %2227 = vmatpush3.bf16.msra.mxu0 %v2574_v2 }
 0x22c   :  { %2228 = vmatprep.subr.bf16.mxu0 %v2719_v7 }
 0x22e   :  { %1577 = vmatpush1.bf16.msra.mxu1 %v2568_v0 }
 0x22f   :  { %1578 = vmatprep.subr.bf16.mxu1 %v2573_v37  ;;  %2229 = vmatpush3.bf16.msra.mxu0 %v2575_v47 }
 0x230   :  { %2230 = vmatprep.subr.bf16.mxu0 %v2719_v7 }
 0x232   :  { %1579 = vmatpush1.bf16.msra.mxu1 %v2571_v39  ;;  %v2576_v39 = vld [vmem:[#allocation8 + $0x10] sm:$0xff]  }
 0x233   :  { %2231 = vmatpush3.bf16.msra.mxu0 %v2576_v39 }
 0x234   :  { %2232 = vmatprep.subr.bf16.mxu0 %v2719_v7 }
 0x235   :  { %1597 = vmatmul.mubr.bf16.vlgmr.msra.gmra.mrb[8].mxu1 %v2892_v55 }
 0x237   :  { %2233 = vmatpush3.bf16.msra.mxu0 %v2577_v41 }
 0x238   :  { %2234 = vmatprep.subr.bf16.mxu0 %v2719_v7 }
 0x23b   :  { %2235 = vmatpush3.bf16.msra.mxu0 %v2578_v42 }
 0x23c   :  { %2236 = vmatprep.subr.bf16.mxu0 %v2719_v7 }
 0x23f   :  { %2237 = vmatpush3.bf16.msra.mxu0 %v2579_v43 }
 0x240   :  { %2238 = vmatprep.subr.bf16.mxu0 %v2719_v7 }
 0x243   :  { %2239 = vmatpush3.bf16.msra.mxu0 %v2580_v44 }
 0x244   :  { %2240 = vmatprep.subr.bf16.mxu0 %v2719_v7 }
 0x2a8   :  { %v1426_v53 = vpop.f32.mrb[4].mxu1  ;;  %v1512_v54 = vpop.f32.mrb[8].mxu0 }
 0x2a9   :  { %v2277_v55 = vadd.f32 %v1426_v53, %v602_v45  ;;  %v2281_v56 = vadd.f32 %v1512_v54, %v610_v46  ;;  %v1428_v49 = vpop.f32.mrb[5].mxu1  ;;  %v1514_v57 = vpop.f32.mrb[9].mxu0 }
 0x2aa   :  { %v2278_v58 = vadd.f32 %v1428_v49, %v606_v51  ;;  %v2282_v59 = vadd.f32 %v1514_v57, %v614_v52  ;;  %v1430_v60 = vpop.f32.mrb[6].mxu1  ;;  %v1516_v61 = vpop.f32.mrb[10].mxu0  ;;  %v111_v49 = vld [vmem:[%s2999_s2 + $0x2] ss:$0 sm:$0xff] }
 0x2ab   :  { %v1607_v62 = vmax.f32 %v2277_v55, 0.0  ;;  %v1609_v63 = vmax.f32 %v2281_v56, 0.0  ;;  %v2279_v48 = vadd.f32 %v1430_v60, %v602_v45  ;;  %v2283_v1 = vadd.f32 %v1516_v61, %v610_v46  ;;  %v1432_v3 = vpop.f32.mrb[7].mxu1  ;;  %v1518_v40 = vpop.f32.mrb[11].mxu0  ;;  %v2581_v45 = vld [vmem:[#allocation8 + $0x38] sm:$0xff]  }
 0x2ac   :  { %v1608_v4 = vmax.f32 %v2278_v58, 0.0  ;;  %v1610_v5 = vmax.f32 %v2282_v59, 0.0  ;;  %v2280_v50 = vadd.f32 %v1432_v3, %v606_v51  ;;  %v2284_v6 = vadd.f32 %v1518_v40, %v614_v52  ;;  %2241 = vmatpush3.bf16.msra.mxu0 %v2581_v45  ;;  %v2582_v3 = vld [vmem:[%s3004_s7] sm:$0xff]  }
 0x2ad   :  { %v1613_v8 = vmax.f32 %v2279_v48, 0.0  ;;  %v1615_v9 = vmax.f32 %v2283_v1, 0.0  ;;  %2246 = vmatprep.subr.bf16.mxu0 %v2719_v7  ;;  %v163_v57 = vadd.f32 %v2884_v36, %v111_v49  ;;  %v166_v58 = vadd.f32 %v2886_v38, %v111_v49  ;;  %v2583_v36 = vld [vmem:[%s3004_s7 + $0x8] sm:$0xff]   ;;  %v2584_v38 = vld [vmem:[%s3004_s7 + $0x10] sm:$0xff]  }
 0x2ae   :  { %v1619_v10 = vadd.f32 %v1608_v4, %v1607_v62  ;;  %v1621_v11 = vadd.f32 %v1610_v5, %v1609_v63  ;;  %v1614_v12 = vmax.f32 %v2280_v50, 0.0  ;;  %v1616_v13 = vmax.f32 %v2284_v6, 0.0  ;;  %v2585_v4 = vld [vmem:[%s3004_s7 + $0x18] sm:$0xff]   ;;  %v2586_v5 = vld [vmem:[%s3004_s7 + $0x20] sm:$0xff]   ;;  %v2587_v50 = vld [vmem:[%s3004_s7 + $0x28] sm:$0xff]  }
 0x2af   :  { %v169_v60 = vmax.f32 %v163_v57, 0.0  ;;  %v170_v61 = vmax.f32 %v166_v58, 0.0  ;;  %v2588_v6 = vld [vmem:[%s3004_s7 + $0x30] sm:$0xff]  }
 0x2b0   :  { %v1620_v14 = vadd.f32 %v1614_v12, %v1613_v8  ;;  %v1622_v15 = vadd.f32 %v1616_v13, %v1615_v9  ;;  %v1625_v16 = vadd.f32 %v1621_v11, %v1619_v10  ;;  %v2589_v8 = vld [vmem:[%s3004_s7 + $0x38] sm:$0xff]   ;;  %v1665_v9 = vld [vmem:[%s2999_s2 + $0x5] ss:$0 sm:$0xff] }
 0x2b2   :  { %v1626_v17 = vadd.f32 %v1622_v15, %v1620_v14 }
 0x308   :  { %v1598_v22 = vpop.f32.mrb[8].mxu1 }
 0x309   :  { %v2285_v23 = vadd.f32 %v1598_v22, %v618_v20  ;;  %v1600_v24 = vpop.f32.mrb[9].mxu1 }
 0x30a   :  { %v2286_v25 = vadd.f32 %v1600_v24, %v622_v21  ;;  %v1602_v26 = vpop.f32.mrb[10].mxu1 }
 0x30b   :  { %v1611_v27 = vmax.f32 %v2285_v23, 0.0  ;;  %v2287_v28 = vadd.f32 %v1602_v26, %v618_v20  ;;  %v1604_v29 = vpop.f32.mrb[11].mxu1  ;;  %v1867_v20 = vld [vmem:[%s2999_s2 + $0x30] ss:$0 sm:$0xff] }
 0x30c   :  { %v1612_v30 = vmax.f32 %v2286_v25, 0.0  ;;  %v2288_v31 = vadd.f32 %v1604_v29, %v622_v21  ;;  %v1774_v21 = vld [vmem:[%s2999_s2 + $0x6] ss:$0 sm:$0xff] }
 0x30d   :  { %v1617_v32 = vmax.f32 %v2287_v28, 0.0 }
 0x30e   :  { %v1623_v33 = vadd.f32 %v1612_v30, %v1611_v27  ;;  %v1618_v34 = vmax.f32 %v2288_v31, 0.0  ;;  %v1866_v30 = vld [vmem:[%s2999_s2 + $0x7] ss:$0 sm:$0xff] }
 0x310   :  { %v1624_v35 = vadd.f32 %v1618_v34, %v1617_v32  ;;  %v1627_v0 = vadd.f32 %v1625_v16, %v1623_v33 }
 0x312   :  { %1629 = vrot.lane.b32.xlu1 %v1627_v0, %s2712_s4  ;;  %v1628_v37 = vadd.f32 %v1626_v17, %v1624_v35 }
 0x316   :  { %1631 = vrot.lane.b32.xlu1 %v1628_v37, %s2712_s4 }
 0x31a   :  { %1870 = vperm.xlu1 %2322, %v1867_v20  }
 0x384   :  { %v1630_v46 = vpop.permute.xlu1 %1629 }
 0x385   :  { %v1633_v51 = vadd.f32 %v1630_v46, %v1627_v0 }
 0x387   :  { %v1635_v54 = vmul.f32 0.083333336, %v1633_v51 }
 0x388   :  { %v1632_v52 = vpop.permute.xlu1 %1631 }
 0x389   :  { %v1634_v53 = vadd.f32 %v1632_v52, %v1628_v37 }
 0x38b   :  { %v1636_v55 = vmul.f32 0.083333336, %v1634_v53 }
 0x38d   :  { %v2317_v56 = vpack.i.bf16 %v1636_v55, %v1635_v54 }
 0x38f   :  { %2318 = vrot.lane.b32.xlu0 %v2317_v56, %s2712_s4 }
 0x399   :  { %v1871_v31 = vpop.permute.xlu1 %1870 }
 0x401   :  { %v2319_v59 = vpop.permute.xlu0 %2318 }
 0x402   :  { %v2321_v62 = vunpack.i.h.bf16 %v2319_v59  ;;  %v2320_v63 = vunpack.i.l.bf16 %v2319_v59 }
 0x404   :  { %v1647_v48 = vsel %vm1645_vm2, %v170_v61, %v2321_v62  ;;  %v1646_v1 = vsel %vm1645_vm2, %v169_v60, %v2320_v63 }
 0x405   :  { %v1648_v40 = vpack.c.bf16 %v1647_v48, %v1646_v1 }
 0x407   :  { %2243 = vmatmul.mubr.bf16.vlgmr.msra.gmra.mrb[12].mxu0 %v1648_v40 }
 0x408   :  { %2247 = vmatpush3.bf16.msra.mxu0 %v2582_v3  ;;  %2262 = vmatprep.mubr.msk.bf16.mxu0 %vm2720_vm0, %v2719_v7 }
 0x409   :  { %2248 = vmatprep.subr.bf16.mxu0 %v2719_v7 }
 0x40c   :  { %2249 = vmatpush3.bf16.msra.mxu0 %v2583_v36 }
 0x40d   :  { %2250 = vmatprep.subr.bf16.mxu0 %v2719_v7 }
 0x410   :  { %2251 = vmatpush3.bf16.msra.mxu0 %v2584_v38 }
 0x411   :  { %2252 = vmatprep.subr.bf16.mxu0 %v2719_v7 }
 0x414   :  { %2253 = vmatpush3.bf16.msra.mxu0 %v2585_v4 }
 0x415   :  { %2254 = vmatprep.subr.bf16.mxu0 %v2719_v7 }
 0x418   :  { %2255 = vmatpush3.bf16.msra.mxu0 %v2586_v5 }
 0x419   :  { %2256 = vmatprep.subr.bf16.mxu0 %v2719_v7 }
 0x41c   :  { %2257 = vmatpush3.bf16.msra.mxu0 %v2587_v50 }
 0x41d   :  { %2258 = vmatprep.subr.bf16.mxu0 %v2719_v7 }
 0x420   :  { %2259 = vmatpush3.bf16.msra.mxu0 %v2588_v6 }
 0x421   :  { %2260 = vmatprep.subr.bf16.mxu0 %v2719_v7 }
 0x424   :  { %2261 = vmatpush3.bf16.msra.mxu0 %v2589_v8 }
 0x425   :  { %2273 = vmatprep.subr.bf16.mxu0 %v2721_v19 }
 0x4da   :  { %v1748_v10 = vpop.f32.mrb[12].mxu0 }
 0x4db   :  { %v1749_v11 = vadd.f32 %v1748_v10, %v1665_v9  ;;  %v2244_v12 = vpop.f32.mrb[13].mxu0 }
 0x4dc   :  { %v1751_v13 = vpop.f32.mrb[14].mxu0 }
 0x4dd   :  { %v1752_v14 = vadd.f32 %v1751_v13, %v1665_v9  ;;  %v2245_v15 = vpop.f32.mrb[15].mxu0  ;;  %v1755_v16 = vmax.f32 %v1749_v11, 0.0 }
 0x4df   :  { %v1756_v17 = vmax.f32 %v1752_v14, 0.0 }
 0x4e1   :  { %v1757_v18 = vpack.c.bf16 %v1756_v17, %v1755_v16 }
 0x4e3   :  { %2263 = vmatmul.mubr.bf16.vlgmr.msra.gmra.mrb[16].mxu0 %v1757_v18 }
 0x4e4   :  { %2270 = vmatprep.mubr.msk.f32.mxu0 %vm2720_vm0, %v2719_v7 }
 0x5b6   :  { %v1857_v22 = vpop.f32.mrb[16].mxu0 }
 0x5b7   :  { %v1858_v23 = vadd.f32 %v1857_v22, %v1774_v21  ;;  %v2264_v24 = vpop.f32.mrb[17].mxu0 }
 0x5b8   :  { %v1860_v25 = vpop.f32.mrb[18].mxu0 }
 0x5b9   :  { %v1861_v26 = vadd.f32 %v1860_v25, %v1774_v21  ;;  %v2265_v27 = vpop.f32.mrb[19].mxu0  ;;  %v1864_v28 = vmax.f32 %v1858_v23, 0.0 }
 0x5bb   :  { %v1865_v29 = vmax.f32 %v1861_v26, 0.0 }
 0x5bd   :  { %v2274_v7 = vpack.c.bf16 %v1865_v29, %v1864_v28 }
 0x5bf   :  { %2276 = vmatpush3.bf16.xpose.msk.msra.mxu0 %vm2275_vm3, %v2274_v7 }
 0x5c6   :  { %2271 = vmatmul.mubr.msk.f32.vlgmr.msra.gmra.mrb[20].mxu0 %vm1645_vm2, %v1866_v30 }
 0x699   :  { %v1948_v32 = vpop.f32.mrb[20].mxu0 }
 0x69a   :  { %v2272_v33 = vpop.f32.mrb[21].mxu0  ;;  %v1949_v34 = vadd.f32 %v1948_v32, %v1871_v31 }
 0x69c   :  { %1953 = vst.msk [vmem:[#allocation10] sm:$0x1] %vm1952_vm4, %v1949_v34 }
 0x69d   :  { %2689 = shalt.err (!%p2686_p8)
}
 0x69e   :  { %s2690_s26 = scalar_lea.hbm %s3005_s8, 16 }
 0x69f   :  { %p2691_p9 = scmp.ne.s32.totalorder %s3005_s8, %s2690_s26  ;;  %p2694_p10 = scmp.lt.u32.totalorder %s2690_s26, %s3005_s8 }
 0x6a1   :  { %p2696_p11 = pnand %p2694_p10, %p2691_p9 }
 0x6a3   :  { %2699 = shalt.err (!%p2696_p11)
}
 0x6a4   :  { %1963 = dma.vmem_to_hbm [thread:$0]  %s1961_s22, 16, %s3005_s8, [#allocation4]  }
 0x6a5   :  { %2706 = dma.done.wait [#allocation4], 16  }
 0x6a6   :  { %2707 = vsyncadd [#allocation4], 4294967280 }
 0x6a7   :  { %1967 = vsyncpa [#allocation3], 1 }
 0x6a8   :  { %1968 = vsyncpa [#allocation6], 1 }
 0x6a9   :  { %1969 = vsyncpa [#allocation9], 1 }
 0x6aa   :  { %1970 = vsyncpa [#allocation4], 1 }

</bundles_post_ra>
